<compile_context>
chip_gen: v7x
topology: tpu7x:2x2x1
jax: 0.10.0
libtpu: 0.0.40
codegen_flags: <defaults>
</compile_context>

<pallas_src>
import math

import jax
import jax.numpy as jnp
from jax.experimental import pallas as pl
from jax.experimental.pallas import tpu as pltpu

BN_EPS = 1e-5
_LANES = 128


# ----------------------------------------------------------------------------- kernel
def _branch_chunk_kernel(x_ref, w1_ref, b1_ref, w2_ref, b2_ref, trans_ref, pred_ref):
    """One grid step = one chunk of NC branch nodes, lane-packed.

    x_ref:     [B, NC*H]        packed inputs (node n -> columns n*H:(n+1)*H)
    w1_ref:    [NC*H, NC*O]     block-diagonal layer1 weights (chunk dim squeezed)
    b1_ref:    [1, NC*O]
    w2_ref:    [NC*O, NC*T]     block-diagonal layer2 weights
    b2_ref:    [1, NC*T]
    trans_ref: [B, NC*O]        packed BN(tanh(linear)) output
    pred_ref:  [B, NC*T]        packed tanh(linear) output
    """
    x = x_ref[...]
    w1 = w1_ref[...]
    b1 = b1_ref[...]

    # layer1: Linear -> Tanh  (single MXU-sized 2-D dot for the whole chunk)
    h = jnp.tanh(jnp.dot(x, w1, preferred_element_type=jnp.float32) + b1)  # [B, NC*O]

    # layer1: BatchNorm1d, training mode, biased variance, affine=False.
    # Fused one-pass stats: sum and sum-of-squares over the batch (sublane) axis.
    inv_b = 1.0 / h.shape[0]
    mean = jnp.sum(h, axis=0, keepdims=True) * inv_b                 # [1, NC*O]
    ex2 = jnp.sum(h * h, axis=0, keepdims=True) * inv_b              # [1, NC*O]
    var = ex2 - mean * mean                                          # biased var
    trans = (h - mean) * jax.lax.rsqrt(var + BN_EPS)                 # [B, NC*O]
    trans_ref[...] = trans.astype(trans_ref.dtype)                   # dense vst

    # layer2: Linear -> Tanh
    w2 = w2_ref[...]
    b2 = b2_ref[...]
    pred = jnp.tanh(jnp.dot(trans, w2, preferred_element_type=jnp.float32) + b2)
    pred_ref[...] = pred.astype(pred_ref.dtype)                      # dense vst


# ----------------------------------------------------------------------------- helpers
def _nodes_per_chunk(n_nodes, h, o, t, lane=_LANES):
    """Smallest node-chunk NC such that NC*H, NC*O, NC*T are all multiples of 128
    (lane-dense blocks).  Falls back to a single chunk (block == full array, always
    layout-legal) when NC would exceed the node count."""
    def align(f):
        return lane // math.gcd(lane, f)

    nc = align(h)
    for f in (o, t):
        a = align(f)
        nc = nc * a // math.gcd(nc, a)
    if nc >= n_nodes:
        return n_nodes
    # TODO(synk): add a VMEM-budget-aware fallback for very large/odd feature dims
    # (block-diag chunk weights scale as NC^2 * Fin * Fout; fine for CellGO sizes).
    return nc


def _block_diag_chunks(w, nc):
    """[N_pad, Fin, Fout] -> [N_pad//nc, nc*Fin, nc*Fout] per-chunk block-diagonals."""
    n_pad, fi, fo = w.shape
    chunks = n_pad // nc
    w = w.reshape(chunks, nc, fi, fo)
    eye = jnp.eye(nc, dtype=w.dtype)
    bd = jnp.einsum("ij,cifo->cifjo", eye, w)        # [chunks, nc, fi, nc, fo]
    return bd.reshape(chunks, nc * fi, nc * fo)


# ----------------------------------------------------------------------------- wrappers
def branch_node_no_gene_layer_batched(x, w1, b1, w2, b2):
    """Batched over N independent branch nodes in ONE pallas_call.

    x:[N,B,H], w1:[N,H,O], b1:[N,O], w2:[N,O,T], b2:[N,T]
    -> (trans:[N,B,O], pred:[N,B,T])
    """
    N, B, H = x.shape
    O = w1.shape[2]
    T = w2.shape[2]

    nc = _nodes_per_chunk(N, H, O, T)
    n_pad = ((N + nc - 1) // nc) * nc
    chunks = n_pad // nc
    pad = n_pad - N
    if pad:
        # Zero-padded dummy nodes are numerically safe (tanh(0)=0, BN of zeros -> 0).
        x = jnp.pad(x, ((0, pad), (0, 0), (0, 0)))
        w1 = jnp.pad(w1, ((0, pad), (0, 0), (0, 0)))
        b1 = jnp.pad(b1, ((0, pad), (0, 0)))
        w2 = jnp.pad(w2, ((0, pad), (0, 0), (0, 0)))
        b2 = jnp.pad(b2, ((0, pad), (0, 0)))

    # Lane-pack activations / biases; block-diagonalize per-chunk weights (XLA side).
    x_packed = jnp.transpose(x, (1, 0, 2)).reshape(B, n_pad * H)
    w1_bd = _block_diag_chunks(w1, nc)               # [chunks, nc*H, nc*O]
    w2_bd = _block_diag_chunks(w2, nc)               # [chunks, nc*O, nc*T]
    b1_packed = b1.reshape(1, n_pad * O)
    b2_packed = b2.reshape(1, n_pad * T)

    trans_packed, pred_packed = pl.pallas_call(
        _branch_chunk_kernel,
        out_shape=(
            jax.ShapeDtypeStruct((B, n_pad * O), jnp.float32),
            jax.ShapeDtypeStruct((B, n_pad * T), jnp.float32),
        ),
        grid=(chunks,),
        in_specs=[
            pl.BlockSpec((B, nc * H), lambda i: (0, i)),
            pl.BlockSpec((None, nc * H, nc * O), lambda i: (i, 0, 0)),
            pl.BlockSpec((1, nc * O), lambda i: (0, i)),
            pl.BlockSpec((None, nc * O, nc * T), lambda i: (i, 0, 0)),
            pl.BlockSpec((1, nc * T), lambda i: (0, i)),
        ],
        out_specs=(
            pl.BlockSpec((B, nc * O), lambda i: (0, i)),
            pl.BlockSpec((B, nc * T), lambda i: (0, i)),
        ),
        compiler_params=pltpu.CompilerParams(
            dimension_semantics=("parallel",),       # megacore split on v7x
        ),
    )(x_packed, w1_bd, b1_packed, w2_bd, b2_packed)

    trans = jnp.transpose(trans_packed.reshape(B, n_pad, O), (1, 0, 2))[:N]
    pred = jnp.transpose(pred_packed.reshape(B, n_pad, T), (1, 0, 2))[:N]
    return trans, pred


def branch_node_no_gene_layer(x, w1, b1, w2, b2):
    """Single-node interface matching the PyTorch module.
    x:[B,H], w1:[H,O], b1:[O], w2:[O,T], b2:[T] -> (trans:[B,O], pred:[B,T])."""
    trans, pred = branch_node_no_gene_layer_batched(
        x[None], w1[None], b1[None], w2[None], b2[None]
    )
    return trans[0], pred[0]


# ----------------------------------------------------------------------------- demo
def _init_linear_stack(key, n, fan_in, fan_out):
    """Deterministic init mimicking nn.Linear default, stacked over n nodes."""
    kw, kb = jax.random.split(key)
    bound = 1.0 / math.sqrt(fan_in)
    w = jax.random.uniform(kw, (n, fan_in, fan_out), jnp.float32, -bound, bound)
    b = jax.random.uniform(kb, (n, fan_out), jnp.float32, -bound, bound)
    return w, b


def _reference(x, w1, b1, w2, b2):
    hp = jax.lax.Precision.HIGHEST
    h = jnp.tanh(jnp.einsum("nbh,nho->nbo", x, w1, precision=hp) + b1[:, None, :])
    m = jnp.mean(h, axis=1, keepdims=True)
    v = jnp.mean((h - m) ** 2, axis=1, keepdims=True)
    trans = (h - m) / jnp.sqrt(v + BN_EPS)
    pred = jnp.tanh(jnp.einsum("nbo,not->nbt", trans, w2, precision=hp) + b2[:, None, :])
    return trans, pred


if __name__ == "__main__":
    batch = 8          # B > 1 required for meaningful training-mode BatchNorm
    hidden_num2 = 32   # layer1 input features
    out_num = 16       # layer1 output / layer2 input
    type_num = 4       # layer2 output (cell types)
    n_nodes = 48       # many branch nodes batched into one kernel (pads to 2 chunks)

    key = jax.random.PRNGKey(0)
    kx, k1, k2 = jax.random.split(key, 3)

    x = jax.random.normal(kx, (n_nodes, batch, hidden_num2), jnp.float32)
    w1, b1 = _init_linear_stack(k1, n_nodes, hidden_num2, out_num)
    w2, b2 = _init_linear_stack(k2, n_nodes, out_num, type_num)

    # Batched path (the optimized one).
    trans_out, predict_out = branch_node_no_gene_layer_batched(x, w1, b1, w2, b2)
    jax.block_until_ready((trans_out, predict_out))

    trans_ref, pred_ref = _reference(x, w1, b1, w2, b2)
    assert jnp.allclose(trans_out, trans_ref, atol=1e-4, rtol=1e-4), "trans_out mismatch"
    assert jnp.allclose(predict_out, pred_ref, atol=1e-4, rtol=1e-4), "predict_out mismatch"

    # Single-node interface (same as the PyTorch module signature).
    t0, p0 = branch_node_no_gene_layer(x[0], w1[0], b1[0], w2[0], b2[0])
    jax.block_until_ready((t0, p0))
    assert jnp.allclose(t0, trans_ref[0], atol=1e-4, rtol=1e-4), "single-node trans mismatch"
    assert jnp.allclose(p0, pred_ref[0], atol=1e-4, rtol=1e-4), "single-node pred mismatch"

    print("KERNEL_OK")
</pallas_src>

<mosaic_0001>
module attributes {stable_mosaic.version = 11 : i64} {
  func.func @_branch_chunk_kernel(%arg0: i32, %arg1: memref<8x1024xf32, #tpu.memory_space<vmem>>, %arg2: memref<1x1024x512xf32, #tpu.memory_space<vmem>>, %arg3: memref<1x512xf32, #tpu.memory_space<vmem>>, %arg4: memref<1x512x128xf32, #tpu.memory_space<vmem>>, %arg5: memref<1x128xf32, #tpu.memory_space<vmem>>, %arg6: memref<8x512xf32, #tpu.memory_space<vmem>>, %arg7: memref<8x128xf32, #tpu.memory_space<vmem>>) attributes {dimension_semantics = [#tpu.dimension_semantics<parallel>], iteration_bounds = array<i64: 2>, scalar_prefetch = 0 : i64, scratch_operands = 0 : i64, tpu.core_type = #tpu.core_type<tc>, window_params = [{transform_indices = @transform_0, window_bounds = array<i64: 8, 1024>}, {transform_indices = @transform_1, window_bounds = array<i64: 1, 1024, 512>}, {transform_indices = @transform_2, window_bounds = array<i64: 1, 512>}, {transform_indices = @transform_3, window_bounds = array<i64: 1, 512, 128>}, {transform_indices = @transform_4, window_bounds = array<i64: 1, 128>}, {transform_indices = @transform_5, window_bounds = array<i64: 8, 512>}, {transform_indices = @transform_6, window_bounds = array<i64: 8, 128>}]} {
    %c0 = arith.constant 0 : index
    %c0_0 = arith.constant 0 : index
    %0 = vector.load %arg1[%c0, %c0_0] : memref<8x1024xf32, #tpu.memory_space<vmem>>, vector<8x1024xf32>
    %c0_1 = arith.constant 0 : index
    %c0_2 = arith.constant 0 : index
    %c0_3 = arith.constant 0 : index
    %1 = vector.load %arg2[%c0_1, %c0_2, %c0_3] : memref<1x1024x512xf32, #tpu.memory_space<vmem>>, vector<1x1024x512xf32>
    %2 = vector.shape_cast %1 : vector<1x1024x512xf32> to vector<1024x512xf32>
    %c0_4 = arith.constant 0 : index
    %c0_5 = arith.constant 0 : index
    %3 = vector.load %arg3[%c0_4, %c0_5] : memref<1x512xf32, #tpu.memory_space<vmem>>, vector<1x512xf32>
    %cst = arith.constant dense<0.000000e+00> : vector<8x512xf32>
    %4 = tpu.matmul %0, %2, %cst {dimension_numbers = #tpu.dot_dimension_numbers<[1], [0], [0], [1], [0, 0, 1, 1], [], []>} : vector<8x1024xf32>, vector<1024x512xf32>, vector<8x512xf32> -> vector<8x512xf32>
    %5 = vector.broadcast %3 : vector<1x512xf32> to vector<8x512xf32>
    %6 = arith.addf %4, %5 : vector<8x512xf32>
    %7 = math.tanh %6 : vector<8x512xf32>
    %cst_6 = arith.constant dense<0.000000e+00> : vector<512xf32>
    %8 = vector.multi_reduction <add>, %7, %cst_6 [0] : vector<8x512xf32> to vector<512xf32>
    %9 = vector.shape_cast %8 : vector<512xf32> to vector<1x512xf32>
    %cst_7 = arith.constant 1.250000e-01 : f32
    %10 = vector.broadcast %cst_7 : f32 to vector<1x512xf32>
    %11 = arith.mulf %9, %10 : vector<1x512xf32>
    %12 = arith.mulf %7, %7 : vector<8x512xf32>
    %cst_8 = arith.constant dense<0.000000e+00> : vector<512xf32>
    %13 = vector.multi_reduction <add>, %12, %cst_8 [0] : vector<8x512xf32> to vector<512xf32>
    %14 = vector.shape_cast %13 : vector<512xf32> to vector<1x512xf32>
    %cst_9 = arith.constant 1.250000e-01 : f32
    %15 = vector.broadcast %cst_9 : f32 to vector<1x512xf32>
    %16 = arith.mulf %14, %15 : vector<1x512xf32>
    %17 = arith.mulf %11, %11 : vector<1x512xf32>
    %18 = arith.subf %16, %17 : vector<1x512xf32>
    %19 = vector.broadcast %11 : vector<1x512xf32> to vector<8x512xf32>
    %20 = arith.subf %7, %19 : vector<8x512xf32>
    %cst_10 = arith.constant 9.99999974E-6 : f32
    %21 = vector.broadcast %cst_10 : f32 to vector<1x512xf32>
    %22 = arith.addf %18, %21 : vector<1x512xf32>
    %23 = math.rsqrt %22 : vector<1x512xf32>
    %24 = vector.broadcast %23 : vector<1x512xf32> to vector<8x512xf32>
    %25 = arith.mulf %20, %24 : vector<8x512xf32>
    %c0_11 = arith.constant 0 : index
    %c0_12 = arith.constant 0 : index
    %26 = vector.load %arg6[%c0_11, %c0_12] : memref<8x512xf32, #tpu.memory_space<vmem>>, vector<8x512xf32>
    tpu.vector_store %arg6[%c0_11, %c0_12], %25 {strides = array<i32>} : memref<8x512xf32, #tpu.memory_space<vmem>>, vector<8x512xf32>,
    %c0_13 = arith.constant 0 : index
    %c0_14 = arith.constant 0 : index
    %c0_15 = arith.constant 0 : index
    %27 = vector.load %arg4[%c0_13, %c0_14, %c0_15] : memref<1x512x128xf32, #tpu.memory_space<vmem>>, vector<1x512x128xf32>
    %28 = vector.shape_cast %27 : vector<1x512x128xf32> to vector<512x128xf32>
    %c0_16 = arith.constant 0 : index
    %c0_17 = arith.constant 0 : index
    %29 = vector.load %arg5[%c0_16, %c0_17] : memref<1x128xf32, #tpu.memory_space<vmem>>, vector<1x128xf32>
    %cst_18 = arith.constant dense<0.000000e+00> : vector<8x128xf32>
    %30 = tpu.matmul %25, %28, %cst_18 {dimension_numbers = #tpu.dot_dimension_numbers<[1], [0], [0], [1], [0, 0, 1, 1], [], []>} : vector<8x512xf32>, vector<512x128xf32>, vector<8x128xf32> -> vector<8x128xf32>
    %31 = vector.broadcast %29 : vector<1x128xf32> to vector<8x128xf32>
    %32 = arith.addf %30, %31 : vector<8x128xf32>
    %33 = math.tanh %32 : vector<8x128xf32>
    %c0_19 = arith.constant 0 : index
    %c0_20 = arith.constant 0 : index
    %34 = vector.load %arg7[%c0_19, %c0_20] : memref<8x128xf32, #tpu.memory_space<vmem>>, vector<8x128xf32>
    tpu.vector_store %arg7[%c0_19, %c0_20], %33 {strides = array<i32>} : memref<8x128xf32, #tpu.memory_space<vmem>>, vector<8x128xf32>,
    return
  }
  func.func @transform_0(%arg0: i32) -> (i32, i32) {
    %c0_i32 = arith.constant 0 : i32
    %c0_i32_0 = arith.constant 0 : i32
    return %c0_i32, %arg0 : i32, i32
  }
  func.func @transform_1(%arg0: i32) -> (i32, i32, i32) {
    %c0_i32 = arith.constant 0 : i32
    %c0_i32_0 = arith.constant 0 : i32
    %c0_i32_1 = arith.constant 0 : i32
    return %arg0, %c0_i32, %c0_i32_0 : i32, i32, i32
  }
  func.func @transform_2(%arg0: i32) -> (i32, i32) {
    %c0_i32 = arith.constant 0 : i32
    %c0_i32_0 = arith.constant 0 : i32
    return %c0_i32, %arg0 : i32, i32
  }
  func.func @transform_3(%arg0: i32) -> (i32, i32, i32) {
    %c0_i32 = arith.constant 0 : i32
    %c0_i32_0 = arith.constant 0 : i32
    %c0_i32_1 = arith.constant 0 : i32
    return %arg0, %c0_i32, %c0_i32_0 : i32, i32, i32
  }
  func.func @transform_4(%arg0: i32) -> (i32, i32) {
    %c0_i32 = arith.constant 0 : i32
    %c0_i32_0 = arith.constant 0 : i32
    return %c0_i32, %arg0 : i32, i32
  }
  func.func @transform_5(%arg0: i32) -> (i32, i32) {
    %c0_i32 = arith.constant 0 : i32
    %c0_i32_0 = arith.constant 0 : i32
    return %c0_i32, %arg0 : i32, i32
  }
  func.func @transform_6(%arg0: i32) -> (i32, i32) {
    %c0_i32 = arith.constant 0 : i32
    %c0_i32_0 = arith.constant 0 : i32
    return %c0_i32, %arg0 : i32, i32
  }
}

</mosaic_0001>

<bundles_post_ra>
// kernel: tpu_custom_call.1
= control target key start
LH: loop header
LB: loop body
LE: loop exit
PB: predicated region body
PF: predicated region fallthrough
CT: control target
= control target key end

     0   :  { %s4091_s0 = inlined_call_operand.hbm [shape: f32[8,2048], index: 0, kind: input, shape index: {}]   ;;  %s4092_s1 = inlined_call_operand.hbm [shape: f32[2,1024,512], index: 1, kind: input, shape index: {}]   ;;  %s4093_s2 = inlined_call_operand.hbm [shape: f32[1,1024], index: 2, kind: input, shape index: {}]   ;;  %s4094_s3 = inlined_call_operand.hbm [shape: f32[2,512,128], index: 3, kind: input, shape index: {}]   ;;  %s4095_s4 = inlined_call_operand.hbm [shape: f32[1,256], index: 4, kind: input, shape index: {}]   ;;  %s4096_s5 = inlined_call_operand.hbm [shape: f32[8,1024], index: 5, kind: output, shape index: {0}]   ;;  %s4097_s6 = inlined_call_operand.hbm [shape: f32[8,256], index: 6, kind: output, shape index: {1}]  }
   0x1   :  { %4107 = sst [smem:[#allocation23_spill]] %s4091_s0 }
   0x2   :  { %4108 = sst [smem:[#allocation24_spill]] %s4092_s1 }
   0x3   :  { %4109 = sst [smem:[#allocation25_spill]] %s4094_s3 }
   0x4   :  { %12 = vsyncpa [#allocation3], 0 }
   0x5   :  { %14 = vsyncpa [#allocation3 + $0x1], 0 }
   0x6   :  { %15 = vsyncpa [#allocation6], 0 }
   0x7   :  { %17 = vsyncpa [#allocation6 + $0x1], 0 }
   0x8   :  { %18 = vsyncpa [#allocation9], 0 }
   0x9   :  { %20 = vsyncpa [#allocation9 + $0x1], 0 }
   0xa   :  { %21 = vsyncpa [#allocation4], 0 }
   0xb   :  { %23 = vsyncpa [#allocation4 + $0x1], 0 }
   0xc   :  { %24 = vsyncpa [#allocation13], 0 }
   0xd   :  { %26 = vsyncpa [#allocation13 + $0x1], 0  ;;  %s3156_s21 = smov 0   ;;  %s3158_s22 = smov 0  }
   0xe   :  { %s3160_s23 = smov 0   ;;  %s3162_s24 = smov 0  }
   0xf LB: > { %4110 = sst [smem:[#allocation19_spill]] %s3104_s23  ;;  %s3177_s25 = sadd.s32 4294967295, %s3108_s24   ;;  %s3108_s24 = sphi %s3162_s24, %s4134_s24   ;;  %s3104_s23 = sphi %s3160_s23, %s4136_s23   ;;  %s3100_s22 = sphi %s3158_s22, %s4138_s22   ;;  %s3096_s21 = sphi %s3156_s21, %s4137_s21  }
  0x10   : > { %s2061_s26 = sadd.s32 4294967294, %s3108_s24   ;;  %s3181_s27 = sadd.s32 1, %s3108_s24  }
  0x11   : > { %4111 = sst [smem:[#allocation20_spill]] %s3181_s27  ;;  %s39_s28 = sadd.s32 1, %s3104_s23 }
  0x12   : > { %s36_s29 = ssub.s32 %s3108_s24, %s3181_s27  ;;  %p46_p0 = scmp.ne.s32.totalorder %s3104_s23, %s3100_s22 }
  0x13   : > { %p37_p1 = scmp.eq.s32.totalorder %s36_s29, 0  ;;  %p47_p2 = scmp.eq.s32.totalorder %s3108_s24, 0 }
  0x14   : > { %p52_p3 = scmp.ne.s32.totalorder %s3100_s22, %s3096_s21  ;;  %p53_p4 = scmp.eq.s32.totalorder %s3177_s25, 0 }
  0x15   : > { %s3193_s30 = scalar_select %p37_p1, %s3104_s23, %s39_s28  }
  0x16   : > { %p48_p5 = por %p47_p2, %p46_p0  ;;  %p3195_p6 = por %p53_p4, %p52_p3 }
  0x17   : > { %4112 = sst [smem:[#allocation21_spill]] %s3193_s30  ;;  %p180_p7 = scmp.eq.s32.totalorder %s3177_s25, 1 }
  0x18   : > { %s4113_s7 = scalar_select %p3195_p6, 1, 0 }
  0x19   : > { %p186_p8 = scmp.eq.s32.totalorder %s2061_s26, 1  ;;  %p2796_p10 = scmp.lt.s32.totalorder %s3108_s24, 2 }
  0x1a   : > { %p3202_p11 = por %p180_p7, %p46_p0  ;;  %s3211_s10 = sand.u32 1, %s3104_s23  }
  0x1b   : > { %p3206_p12 = por %p186_p8, %p52_p3  ;;  %p3213_p13 = pnand %p2796_p10, %p48_p5 }
  0x1c   : > { %s4114_s8 = scalar_select %p3202_p11, 1, 0 }
  0x1d   : > { %s4115_s9 = scalar_select %p3206_p12, 1, 0 }
  0x1e   : > { %s4117_s11 = scalar_select %p3213_p13, 1, 0 }
  0x1f   : > { %4116 = sst [smem:[#allocation22_spill]] %s4115_s9  ;;  %s4100_s12 = sand.u32 1, %s3108_s24  }
  0x20   : > { %s2067_s13 = sshll.u32 %s3211_s10, 12  ;;  %s2093_s14 = sshll.u32 %s3108_s24, 16 }
  0x21   : > { %s4118_s1 = sld [smem:[#allocation24_spill]]  ;;  %s255_s18 = scalar_lea.vmem [#allocation5], %s2067_s13 }
  0x22   : > { %s262_s19 = sshll.u32 %s255_s18, 4  ;;  %s3230_s20 = scalar_lea.sflag [#allocation6], %s4100_s12  ;;  %s3225_s19 = int_to_ptr.vmem [resolvable:$true] %s262_s19 }
  0x23   : > { %p3236_p2 = pneg %p3213_p13 }
  0x27   : > { %s3223_s17 = scalar_lea.hbm %s4118_s1, %s2093_s14  ;;  %s2857_s14 = scalar_lea.hbm %s4118_s1, 131072 }
  0x28   : > { %s2852_s26 = scalar_lea.hbm %s3223_s17, 65536  ;;  %p2858_p5 = scmp.lt.u32.totalorder %s3223_s17, %s4118_s1 }
  0x29   : > { %p2853_p1 = scmp.ne.s32.totalorder %s3223_s17, %s2852_s26  ;;  %p2859_p7 = scmp.lt.u32.totalorder %s2857_s14, %s2852_s26 }
  0x2a   : > { %p2861_p10 = scmp.lt.u32.totalorder %s2852_s26, %s3223_s17 }
  0x2b   : > { %p2855_p3 = pnand %p3236_p2, %p2853_p1  ;;  %p2860_p8 = por %p2859_p7, %p2858_p5 }
  0x2d   : > { %p2856_p4 = pneg %p2855_p3  ;;  %p2862_p9 = por %p2861_p10, %p2860_p8 }
  0x2f   : > { %p2863_p0 = pnand %p2862_p9, %p2856_p4 }
  0x31   : > { %2866 = shalt.err (!%p2863_p0)
}
  0x32   : > { %s2867_s18 = scalar_lea.vmem %s3225_s19, 65536  ;;  %s3110_s29 = smov [#allocation5]  }
  0x33   : > { %p2868_p1 = scmp.ne.s32.totalorder %s3225_s19, %s2867_s18  ;;  %s2872_s13 = sshll.u32 %s3110_s29, 4  ;;  %s2873_s13 = int_to_ptr.vmem [resolvable:$false] %s2872_s13 }
  0x34   : > { %s2874_s15 = scalar_lea.vmem %s2873_s13, 131072  ;;  %p2875_p11 = scmp.lt.s32.totalorder %s3225_s19, %s2873_s13 }
  0x35   : > { %p2870_p3 = pnand %p2868_p1, %p3236_p2  ;;  %p2876_p6 = scmp.lt.s32.totalorder %s2874_s15, %s2867_s18 }
  0x37   : > { %p2871_p12 = pneg %p2870_p3  ;;  %p2877_p5 = por %p2876_p6, %p2875_p11 }
  0x39   : > { %p2878_p7 = pnand %p2877_p5, %p2871_p12 }
  0x3b   : > { %2881 = shalt.err (!%p2878_p7)
}
  0x3c   : > { %s3111_s26 = smov 512   ;;  %s3112_s14 = smov 32  }
  0x3d   : > { %2779 = dma.hbm_to_vmem [thread:$0]  (!%p3213_p13), %s3223_s17, 65536, %s3225_s19, %s3230_s20, %s3111_s26, %s3111_s26, %s3112_s14  }
  0x3e   : > { %p327_p9 = scmp.lt.s32.totalorder %s3108_s24, 3  ;;  %s2073_s16 = sshll.u32 %s3211_s10, 9 }
  0x3f   : > { %s2095_s18 = sshll.u32 %s3108_s24, 13  ;;  %p4120_p6 = scmp.ge.s32.totalorder %s3108_s24, 1 }
  0x40   : > { %s4122_s3 = sld [smem:[#allocation25_spill]]  ;;  %s295_s1 = scalar_lea.vmem [#allocation8], %s2073_s16 }
  0x41   : > { %p3265_p11 = pnand %p4120_p6, %p327_p9  ;;  %s302_s30 = sshll.u32 %s295_s1, 4  ;;  %s3274_s30 = int_to_ptr.vmem [resolvable:$true] %s302_s30 }
  0x42   : > { %s4123_s17 = sand.u32 1, %s3108_s24  }
  0x43   : > { %s4121_s29 = scalar_select %p3265_p11, 1, 0 }
  0x44   : > { %s3278_s19 = scalar_lea.sflag [#allocation9], %s4123_s17 }
  0x46   : > { %s3272_s12 = scalar_lea.hbm %s4122_s3, %s2095_s18  ;;  %s2887_s18 = scalar_lea.hbm %s4122_s3, 16384 }
  0x47   : > { %s2882_s26 = scalar_lea.hbm %s3272_s12, 8192  ;;  %p2888_p8 = scmp.lt.u32.totalorder %s3272_s12, %s4122_s3 }
  0x48   : > { %p2883_p12 = scmp.ne.s32.totalorder %s3272_s12, %s2882_s26  ;;  %p2889_p10 = scmp.lt.u32.totalorder %s2887_s18, %s2882_s26 }
  0x49   : > { %p2891_p3 = scmp.lt.u32.totalorder %s2882_s26, %s3272_s12 }
  0x4a   : > { %p2885_p0 = pnand %p2883_p12, %p3236_p2  ;;  %p2890_p1 = por %p2889_p10, %p2888_p8 }
  0x4c   : > { %p2886_p4 = pneg %p2885_p0  ;;  %p2892_p5 = por %p2891_p3, %p2890_p1 }
  0x4e   : > { %p2893_p7 = pnand %p2892_p5, %p2886_p4 }
  0x50   : > { %2896 = shalt.err (!%p2893_p7)
}
  0x51   : > { %s2897_s1 = scalar_lea.vmem %s3274_s30, 8192  ;;  %s3113_s16 = smov [#allocation8]  }
  0x52   : > { %p2898_p9 = scmp.ne.s32.totalorder %s3274_s30, %s2897_s1  ;;  %s2902_s17 = sshll.u32 %s3113_s16, 4  ;;  %s2903_s17 = int_to_ptr.vmem [resolvable:$false] %s2902_s17 }
  0x53   : > { %s2904_s23 = scalar_lea.vmem %s2903_s17, 16384  ;;  %p2905_p0 = scmp.lt.s32.totalorder %s3274_s30, %s2903_s17 }
  0x54   : > { %p2900_p6 = pnand %p2898_p9, %p3236_p2  ;;  %p2906_p11 = scmp.lt.s32.totalorder %s2904_s23, %s2897_s1 }
  0x56   : > { %p2901_p12 = pneg %p2900_p6  ;;  %p2907_p8 = por %p2906_p11, %p2905_p0 }
  0x58   : > { %p2908_p10 = pnand %p2907_p8, %p2901_p12 }
  0x5a   : > { %2911 = shalt.err (!%p2908_p10)
}
  0x5b   : > { %s3114_s26 = smov 128   ;;  %s3115_s14 = smov 8  }
  0x5c   : > { %2785 = dma.hbm_to_vmem [thread:$0]  (!%p3213_p13), %s3272_s12, 8192, %s3274_s30, %s3278_s19, %s3114_s26, %s3114_s26, %s3115_s14  }
  0x5d   : > { %s2064_s13 = sshll.u32 %s3211_s10, 6  ;;  %s2092_s18 = sshll.u32 %s3108_s24, 10 }
  0x5e   : > { %s4124_s0 = sld [smem:[#allocation23_spill]]  ;;  %s236_s17 = scalar_lea.vmem [#allocation2], %s2064_s13 }
  0x5f   : > { %s244_s23 = sshll.u32 %s236_s17, 4  ;;  %s2070_s3 = sshll.u32 %s3211_s10, 2  ;;  %s245_s23 = int_to_ptr.vmem [resolvable:$true] %s244_s23 }
  0x60   : > { %s233_s27 = scalar_lea.sflag [#allocation3], %s3211_s10 }
  0x64   : > { %s3307_s16 = scalar_lea.hbm %s4124_s0, %s2092_s18  ;;  %s2917_s26 = scalar_lea.hbm %s4124_s0, 2048 }
  0x65   : > { %s2912_s9 = scalar_lea.hbm %s3307_s16, 1024  ;;  %p2918_p3 = scmp.lt.u32.totalorder %s3307_s16, %s4124_s0 }
  0x66   : > { %p2913_p11 = scmp.ne.s32.totalorder %s3307_s16, %s2912_s9  ;;  %p2919_p5 = scmp.lt.u32.totalorder %s2917_s26, %s2912_s9 }
  0x67   : > { %p2921_p9 = scmp.lt.u32.totalorder %s2912_s9, %s3307_s16 }
  0x68   : > { %p2915_p4 = pnand %p2913_p11, %p3236_p2  ;;  %p2920_p7 = por %p2919_p5, %p2918_p3 }
  0x6a   : > { %p2916_p1 = pneg %p2915_p4  ;;  %p2922_p6 = por %p2921_p9, %p2920_p7 }
  0x6c   : > { %p2923_p12 = pnand %p2922_p6, %p2916_p1 }
  0x6e   : > { %2926 = shalt.err (!%p2923_p12)
}
  0x6f   : > { %s2927_s13 = scalar_lea.vmem %s245_s23, 1024  ;;  %s3116_s15 = smov [#allocation2]  }
  0x70   : > { %p2928_p0 = scmp.ne.s32.totalorder %s245_s23, %s2927_s13  ;;  %s2932_s1 = sshll.u32 %s3116_s15, 4  ;;  %s2933_s1 = int_to_ptr.vmem [resolvable:$false] %s2932_s1 }
  0x71   : > { %s2934_s17 = scalar_lea.vmem %s2933_s1, 2048  ;;  %p2935_p11 = scmp.lt.s32.totalorder %s245_s23, %s2933_s1 }
  0x72   : > { %p2930_p8 = pnand %p2928_p0, %p3236_p2  ;;  %p2936_p4 = scmp.lt.s32.totalorder %s2934_s17, %s2927_s13 }
  0x74   : > { %p2931_p10 = pneg %p2930_p8  ;;  %p2937_p13 = por %p2936_p4, %p2935_p11 }
  0x76   : > { %p2938_p3 = pnand %p2937_p13, %p2931_p10 }
  0x78   : > { %2941 = shalt.err (!%p2938_p3)
}
  0x79   : > { %p4125_p5 = scmp.ne.s32.totalorder %s4117_s11, 0  ;;  %s2094_s9 = sshll.u32 %s3108_s24, 6 }
  0x7a   : > { %s276_s30 = scalar_lea.vmem [#allocation7], %s2070_s3  ;;  %s282_s18 = scalar_lea.hbm %s4093_s2, %s2094_s9 }
  0x7b   : > { %2776 = dma.hbm_to_vmem [thread:$0]  (!%p4125_p5), %s3307_s16, 1024, %s245_s23, %s233_s27  }
  0x7c   : > { %s284_s12 = sshll.u32 %s276_s30, 4  ;;  %s2942_s13 = scalar_lea.hbm %s282_s18, 64  ;;  %s285_s12 = int_to_ptr.vmem [resolvable:$true] %s284_s12 }
  0x7d   : > { %p2943_p1 = scmp.ne.s32.totalorder %s282_s18, %s2942_s13  ;;  %s2947_s17 = scalar_lea.hbm %s4093_s2, 128 }
  0x7e   : > { %p2948_p9 = scmp.lt.u32.totalorder %s282_s18, %s4093_s2  ;;  %p2949_p6 = scmp.lt.u32.totalorder %s2947_s17, %s2942_s13 }
  0x7f   : > { %p2945_p13 = pnand %p2943_p1, %p3236_p2  ;;  %p2951_p0 = scmp.lt.u32.totalorder %s2942_s13, %s282_s18 }
  0x80   : > { %p2950_p12 = por %p2949_p6, %p2948_p9 }
  0x81   : > { %p2946_p7 = pneg %p2945_p13 }
  0x82   : > { %p2952_p8 = por %p2951_p0, %p2950_p12 }
  0x84   : > { %p2953_p10 = pnand %p2952_p8, %p2946_p7 }
  0x86   : > { %2956 = shalt.err (!%p2953_p10)
}
  0x87   : > { %s2957_s3 = scalar_lea.vmem %s285_s12, 64  ;;  %s3117_s16 = smov [#allocation7]  }
  0x88   : > { %p2958_p11 = scmp.ne.s32.totalorder %s285_s12, %s2957_s3  ;;  %s2962_s23 = sshll.u32 %s3117_s16, 4  ;;  %s2963_s23 = int_to_ptr.vmem [resolvable:$false] %s2962_s23 }
  0x89   : > { %s2964_s9 = scalar_lea.vmem %s2963_s23, 128  ;;  %p2965_p1 = scmp.lt.s32.totalorder %s285_s12, %s2963_s23 }
  0x8a   : > { %p2960_p4 = pnand %p2958_p11, %p3236_p2  ;;  %p2966_p13 = scmp.lt.s32.totalorder %s2964_s9, %s2957_s3 }
  0x8c   : > { %p2961_p3 = pneg %p2960_p4  ;;  %p2967_p5 = por %p2966_p13, %p2965_p1 }
  0x8e   : > { %p2968_p6 = pnand %p2967_p5, %p2961_p3 }
  0x90   : > { %2971 = shalt.err (!%p2968_p6)
}
  0x91   : > { %p4126_p9 = scmp.ne.s32.totalorder %s4117_s11, 0  ;;  %s2076_s0 = sshll.u32 %s3108_s24, 4 }
  0x92   : > { %s3351_s14 = scalar_lea.hbm %s4095_s4, %s2076_s0  ;;  %s315_s13 = scalar_lea.vmem [#allocation10], %s3211_s10 }
  0x93   : > { %2782 = dma.hbm_to_vmem [thread:$0]  (!%p4126_p9), %s282_s18, 64, %s285_s12, %s3230_s20  }
  0x94   : > { %s322_s15 = sshll.u32 %s315_s13, 4  ;;  %s2972_s1 = scalar_lea.hbm %s3351_s14, 16  ;;  %s323_s15 = int_to_ptr.vmem [resolvable:$true] %s322_s15 }
  0x95   : > { %p2973_p5 = scmp.ne.s32.totalorder %s3351_s14, %s2972_s1  ;;  %s2977_s12 = scalar_lea.hbm %s4095_s4, 32 }
  0x96   : > { %p2978_p0 = scmp.lt.u32.totalorder %s3351_s14, %s4095_s4  ;;  %p2979_p8 = scmp.lt.u32.totalorder %s2977_s12, %s2972_s1 }
  0x97   : > { %p2975_p7 = pnand %p2973_p5, %p3236_p2  ;;  %p2981_p11 = scmp.lt.u32.totalorder %s2972_s1, %s3351_s14 }
  0x98   : > { %p2980_p10 = por %p2979_p8, %p2978_p0 }
  0x99   : > { %p2976_p12 = pneg %p2975_p7 }
  0x9a   : > { %p2982_p4 = por %p2981_p11, %p2980_p10 }
  0x9c   : > { %p2983_p3 = pnand %p2982_p4, %p2976_p12 }
  0x9e   : > { %2986 = shalt.err (!%p2983_p3)
}
  0x9f   : > { %s2987_s10 = scalar_lea.vmem %s323_s15, 16  ;;  %s3118_s3 = smov [#allocation10]  }
  0xa0   : > { %p2988_p1 = scmp.ne.s32.totalorder %s323_s15, %s2987_s10  ;;  %s2992_s16 = sshll.u32 %s3118_s3, 4  ;;  %s2993_s16 = int_to_ptr.vmem [resolvable:$false] %s2992_s16 }
  0xa1   : > { %s2994_s23 = scalar_lea.vmem %s2993_s16, 32  ;;  %p2995_p5 = scmp.lt.s32.totalorder %s323_s15, %s2993_s16 }
  0xa2   : > { %p2990_p13 = pnand %p2988_p1, %p3236_p2  ;;  %p2996_p7 = scmp.lt.s32.totalorder %s2994_s23, %s2987_s10 }
  0xa4   : > { %p2991_p6 = pneg %p2990_p13  ;;  %p2997_p9 = por %p2996_p7, %p2995_p5 }
  0xa6   : > { %p2998_p0 = pnand %p2997_p9, %p2991_p6 }
  0xa8   : > { %3001 = shalt.err (!%p2998_p0)
}
  0xa9   : > { %p4127_p8 = scmp.ne.s32.totalorder %s4117_s11, 0  ;;  %p4128_p12 = scmp.ne.s32.totalorder %s4121_s29, 0 }
  0xaa   : > { %s3375_s28 = sand.u32 (!%p4128_p12), 1, %s3100_s22   ;;  %p4129_p2 = scmp.ne.s32.totalorder (!%p4128_p12), %s4113_s7, 0 }
  0xab   : > { %2788 = dma.hbm_to_vmem [thread:$0]  (!%p4127_p8), %s3351_s14, 16, %s323_s15, %s3278_s19  }
  0xac   : > { %331 = sbr.rel (%p4128_p12) target bundleno = 952 (0x3b8), region = 40  ;;  %s2078_s9 = sshll.u32 (!%p4128_p12), %s3375_s28, 6 }
  0xad   : > { %s334_s0 = scalar_lea.sflag (!%p4128_p12), [#allocation3], %s3375_s28  ;;  %s3379_s30 = scalar_lea.vmem (!%p4128_p12), [#allocation2], %s2078_s9 }
  0xb3   : > { %3075 = dma.done.wait (%p4129_p2), %s334_s0, 1024  }
  0xb4   : > { %3077 = vsyncadd (%p4129_p2), %s334_s0, 4294966272  ;;  %s342_s11 = sand.u32 1, %s3177_s25   ;;  %s2079_s29 = sshll.u32 %s3375_s28, 12 }
  0xb5   : > { %s343_s19 = scalar_lea.sflag [#allocation6], %s342_s11  ;;  %s3387_s26 = scalar_lea.vmem [#allocation5], %s2079_s29 }
  0xb6   : > { %3079 = dma.done.wait (%p4129_p2), %s343_s19, 65600  }
  0xb7   : > { %3081 = vsyncadd (%p4129_p2), %s343_s19, 4294901696  ;;  %s2080_s14 = sshll.u32 %s3375_s28, 2  ;;  %s2081_s13 = sshll.u32 %s3375_s28, 9 }
  0xb8   : > { %s3395_s15 = scalar_lea.vmem [#allocation7], %s2080_s14  ;;  %s361_s1 = scalar_lea.sflag [#allocation9], %s342_s11 }
  0xb9   : > { %s3397_s17 = scalar_lea.vmem [#allocation8], %s2081_s13 }
  0xba   : > { %3083 = dma.done.wait (%p4129_p2), %s361_s1, 8208  }
  0xbb   : > { %3085 = vsyncadd (%p4129_p2), %s361_s1, 4294959088  ;;  %v437_v0 = vld [vmem:[%s3387_s26 + $0x8] sm:$0xff]  ;;  %v439_v2 = vld [vmem:[%s3387_s26 + $0x18] sm:$0xff]  ;;  %s2082_s7 = sshll.u32 %s3375_s28, 5  ;;  %s2096_s12 = sshll.u32 %s3177_s25, 9 }
  0xbc   : > { %v441_v1 = vld [vmem:[%s3387_s26 + $0x28] sm:$0xff]  ;;  %v443_v4 = vld [vmem:[%s3387_s26 + $0x38] sm:$0xff]  ;;  %v436_v5 = vld [vmem:[%s3387_s26] sm:$0xff]  ;;  %s417_s20 = scalar_lea.vmem [#allocation11], %s2082_s7  ;;  %s4021_s10 = scalar_lea.hbm %s4096_s5, %s2096_s12 }
  0xbd   : > { %v2167_v3 = vpack.c.bf16 %v441_v1, %v437_v0  ;;  %v440_v6 = vld [vmem:[%s3387_s26 + $0x20] sm:$0xff]  ;;  %v2423_v7 = vpack.c.bf16 %v443_v4, %v439_v2  ;;  %v438_v9 = vld [vmem:[%s3387_s26 + $0x10] sm:$0xff]  ;;  %v445_v11 = vld [vmem:[%s3387_s26 + $0x48] sm:$0xff]  ;;  %s1863_s3 = sshll.u32 %s417_s20, 4  ;;  %s1844_s16 = scalar_lea.sflag [#allocation4], %s3375_s28  ;;  %s1864_s3 = int_to_ptr.vmem [resolvable:$true] %s1863_s3 }
  0xbe   : > { %v2169_v8 = vpack.c.bf16 %v440_v6, %v436_v5  ;;  %v442_v10 = vld [vmem:[%s3387_s26 + $0x30] sm:$0xff]  ;;  %v449_v13 = vld [vmem:[%s3387_s26 + $0x68] sm:$0xff]  ;;  %v447_v14 = vld [vmem:[%s3387_s26 + $0x58] sm:$0xff]  ;;  %s3002_s23 = scalar_lea.vmem %s1864_s3, 512  ;;  %p4130_p10 = scmp.ne.s32.totalorder %s4114_s8, 0 }
  0xbf   : > { %2168 = vmatprep.subr.bf16.mxu0 %v2167_v3  ;;  %v2425_v12 = vpack.c.bf16 %v442_v10, %v438_v9  ;;  %v451_v15 = vld [vmem:[%s3387_s26 + $0x78] sm:$0xff]  ;;  %2424 = vmatprep.subr.bf16.mxu1 %v2423_v7  ;;  %v2171_v16 = vpack.c.bf16 %v449_v13, %v445_v11  ;;  %v444_v18 = vld [vmem:[%s3387_s26 + $0x40] sm:$0xff]  ;;  %v446_v20 = vld [vmem:[%s3387_s26 + $0x50] sm:$0xff]  ;;  %p3003_p9 = scmp.ne.s32.totalorder %s1864_s3, %s3002_s23  ;;  %s3119_s9 = smov [#allocation11]  }
  0xc0   : > { %2170 = vmatpush1.bf16.msra.mxu0 %v2169_v8  ;;  %v2427_v17 = vpack.c.bf16 %v451_v15, %v447_v14  ;;  %v448_v19 = vld [vmem:[%s3387_s26 + $0x60] sm:$0xff]  ;;  %v450_v22 = vld [vmem:[%s3387_s26 + $0x70] sm:$0xff]  ;;  %v453_v23 = vld [vmem:[%s3387_s26 + $0x88] sm:$0xff]  ;;  %s3006_s0 = sshll.u32 %s3119_s9, 4  ;;  %s3007_s0 = int_to_ptr.vmem [resolvable:$false] %s3006_s0 }
  0xc1   : > { %2426 = vmatpush1.bf16.msra.mxu1 %v2425_v12  ;;  %v2173_v21 = vpack.c.bf16 %v448_v19, %v444_v18  ;;  %v457_v24 = vld [vmem:[%s3387_s26 + $0xa8] sm:$0xff]  ;;  %2172 = vmatprep.subr.bf16.mxu0 %v2171_v16  ;;  %v2429_v25 = vpack.c.bf16 %v450_v22, %v446_v20  ;;  %v455_v27 = vld [vmem:[%s3387_s26 + $0x98] sm:$0xff]  ;;  %v452_v29 = vld [vmem:[%s3387_s26 + $0x80] sm:$0xff]  ;;  %p3004_p11 = pnand %p3003_p9, %p4130_p10  ;;  %p3009_p3 = scmp.lt.s32.totalorder %s1864_s3, %s3007_s0 }
  0xc2   : > { %2428 = vmatprep.subr.bf16.mxu1 %v2427_v17  ;;  %v2175_v26 = vpack.c.bf16 %v457_v24, %v453_v23  ;;  %v459_v28 = vld [vmem:[%s3387_s26 + $0xb8] sm:$0xff]  ;;  %v456_v31 = vld [vmem:[%s3387_s26 + $0xa0] sm:$0xff]  ;;  %v454_v32 = vld [vmem:[%s3387_s26 + $0x90] sm:$0xff] }
  0xc3   : > { %v2431_v30 = vpack.c.bf16 %v459_v28, %v455_v27  ;;  %v458_v33 = vld [vmem:[%s3387_s26 + $0xb0] sm:$0xff]  ;;  %v2177_v34 = vpack.c.bf16 %v456_v31, %v452_v29  ;;  %v461_v35 = vld [vmem:[%s3387_s26 + $0xc8] sm:$0xff]  ;;  %v463_v37 = vld [vmem:[%s3387_s26 + $0xd8] sm:$0xff]  ;;  %p3005_p4 = pneg %p3004_p11 }
  0xc4   : > { %2174 = vmatpush1.bf16.msra.mxu0 %v2173_v21  ;;  %v465_v36 = vld [vmem:[%s3387_s26 + $0xe8] sm:$0xff]  ;;  %v2433_v38 = vpack.c.bf16 %v458_v33, %v454_v32  ;;  %v467_v40 = vld [vmem:[%s3387_s26 + $0xf8] sm:$0xff]  ;;  %v460_v41 = vld [vmem:[%s3387_s26 + $0xc0] sm:$0xff] }
  0xc5   : > { %2430 = vmatpush1.bf16.msra.mxu1 %v2429_v25  ;;  %2176 = vmatprep.subr.bf16.mxu0 %v2175_v26  ;;  %v2179_v39 = vpack.c.bf16 %v465_v36, %v461_v35  ;;  %v464_v42 = vld [vmem:[%s3387_s26 + $0xe0] sm:$0xff]  ;;  %v2435_v43 = vpack.c.bf16 %v467_v40, %v463_v37  ;;  %v462_v44 = vld [vmem:[%s3387_s26 + $0xd0] sm:$0xff]  ;;  %v469_v46 = vld [vmem:[%s3387_s26 + $0x108] sm:$0xff] }
  0xc6   : > { %2432 = vmatprep.subr.bf16.mxu1 %v2431_v30  ;;  %v466_v45 = vld [vmem:[%s3387_s26 + $0xf0] sm:$0xff]  ;;  %v473_v47 = vld [vmem:[%s3387_s26 + $0x128] sm:$0xff]  ;;  %v471_v48 = vld [vmem:[%s3387_s26 + $0x118] sm:$0xff]  ;;  %v2181_v50 = vpack.c.bf16 %v464_v42, %v460_v41 }
  0xc7   : > { %v475_v49 = vld [vmem:[%s3387_s26 + $0x138] sm:$0xff]  ;;  %v2437_v51 = vpack.c.bf16 %v466_v45, %v462_v44  ;;  %v2183_v52 = vpack.c.bf16 %v473_v47, %v469_v46  ;;  %v468_v53 = vld [vmem:[%s3387_s26 + $0x100] sm:$0xff]  ;;  %v470_v55 = vld [vmem:[%s3387_s26 + $0x110] sm:$0xff] }
  0xc8   : > { %2178 = vmatpush1.bf16.msra.mxu0 %v2177_v34  ;;  %v472_v54 = vld [vmem:[%s3387_s26 + $0x120] sm:$0xff]  ;;  %v2439_v56 = vpack.c.bf16 %v475_v49, %v471_v48  ;;  %v474_v57 = vld [vmem:[%s3387_s26 + $0x130] sm:$0xff]  ;;  %v477_v58 = vld [vmem:[%s3387_s26 + $0x148] sm:$0xff] }
  0xc9   : > { %2434 = vmatpush1.bf16.msra.mxu1 %v2433_v38  ;;  %2180 = vmatprep.subr.bf16.mxu0 %v2179_v39  ;;  %v481_v59 = vld [vmem:[%s3387_s26 + $0x168] sm:$0xff]  ;;  %v479_v60 = vld [vmem:[%s3387_s26 + $0x158] sm:$0xff]  ;;  %v2185_v62 = vpack.c.bf16 %v472_v54, %v468_v53  ;;  %v2441_v63 = vpack.c.bf16 %v474_v57, %v470_v55  ;;  %v476_v1 = vld [vmem:[%s3387_s26 + $0x140] sm:$0xff] }
  0xca   : > { %2436 = vmatprep.subr.bf16.mxu1 %v2435_v43  ;;  %v483_v61 = vld [vmem:[%s3387_s26 + $0x178] sm:$0xff]  ;;  %v2187_v0 = vpack.c.bf16 %v481_v59, %v477_v58  ;;  %v480_v2 = vld [vmem:[%s3387_s26 + $0x160] sm:$0xff]  ;;  %v478_v3 = vld [vmem:[%s3387_s26 + $0x150] sm:$0xff] }
  0xcb   : > { %v2443_v4 = vpack.c.bf16 %v483_v61, %v479_v60  ;;  %v482_v5 = vld [vmem:[%s3387_s26 + $0x170] sm:$0xff]  ;;  %v485_v6 = vld [vmem:[%s3387_s26 + $0x188] sm:$0xff]  ;;  %v487_v8 = vld [vmem:[%s3387_s26 + $0x198] sm:$0xff]  ;;  %v2189_v10 = vpack.c.bf16 %v480_v2, %v476_v1 }
  0xcc   : > { %2182 = vmatpush1.bf16.msra.mxu0 %v2181_v50  ;;  %v489_v7 = vld [vmem:[%s3387_s26 + $0x1a8] sm:$0xff]  ;;  %v491_v9 = vld [vmem:[%s3387_s26 + $0x1b8] sm:$0xff]  ;;  %v2445_v11 = vpack.c.bf16 %v482_v5, %v478_v3  ;;  %v484_v13 = vld [vmem:[%s3387_s26 + $0x180] sm:$0xff] }
  0xcd   : > { %2438 = vmatpush1.bf16.msra.mxu1 %v2437_v51  ;;  %2184 = vmatprep.subr.bf16.mxu0 %v2183_v52  ;;  %v2191_v12 = vpack.c.bf16 %v489_v7, %v485_v6  ;;  %v488_v14 = vld [vmem:[%s3387_s26 + $0x1a0] sm:$0xff]  ;;  %v486_v15 = vld [vmem:[%s3387_s26 + $0x190] sm:$0xff]  ;;  %v2447_v16 = vpack.c.bf16 %v491_v9, %v487_v8  ;;  %v493_v18 = vld [vmem:[%s3387_s26 + $0x1c8] sm:$0xff] }
  0xce   : > { %2440 = vmatprep.subr.bf16.mxu1 %v2439_v56  ;;  %v490_v17 = vld [vmem:[%s3387_s26 + $0x1b0] sm:$0xff]  ;;  %v497_v19 = vld [vmem:[%s3387_s26 + $0x1e8] sm:$0xff]  ;;  %v495_v20 = vld [vmem:[%s3387_s26 + $0x1d8] sm:$0xff]  ;;  %v2193_v22 = vpack.c.bf16 %v488_v14, %v484_v13 }
  0xcf   : > { %v499_v21 = vld [vmem:[%s3387_s26 + $0x1f8] sm:$0xff]  ;;  %v2449_v23 = vpack.c.bf16 %v490_v17, %v486_v15  ;;  %v2195_v24 = vpack.c.bf16 %v497_v19, %v493_v18  ;;  %v492_v25 = vld [vmem:[%s3387_s26 + $0x1c0] sm:$0xff]  ;;  %v494_v27 = vld [vmem:[%s3387_s26 + $0x1d0] sm:$0xff] }
  0xd0   : > { %2186 = vmatpush1.bf16.msra.mxu0 %v2185_v62  ;;  %v496_v26 = vld [vmem:[%s3387_s26 + $0x1e0] sm:$0xff]  ;;  %v2451_v28 = vpack.c.bf16 %v499_v21, %v495_v20  ;;  %v498_v29 = vld [vmem:[%s3387_s26 + $0x1f0] sm:$0xff]  ;;  %v501_v30 = vld [vmem:[%s3387_s26 + $0x208] sm:$0xff] }
  0xd1   : > { %2442 = vmatpush1.bf16.msra.mxu1 %v2441_v63  ;;  %2188 = vmatprep.subr.bf16.mxu0 %v2187_v0  ;;  %v505_v31 = vld [vmem:[%s3387_s26 + $0x228] sm:$0xff]  ;;  %v503_v32 = vld [vmem:[%s3387_s26 + $0x218] sm:$0xff]  ;;  %v2197_v34 = vpack.c.bf16 %v496_v26, %v492_v25  ;;  %v2453_v35 = vpack.c.bf16 %v498_v29, %v494_v27  ;;  %v500_v37 = vld [vmem:[%s3387_s26 + $0x200] sm:$0xff] }
  0xd2   : > { %2444 = vmatprep.subr.bf16.mxu1 %v2443_v4  ;;  %v507_v33 = vld [vmem:[%s3387_s26 + $0x238] sm:$0xff]  ;;  %v2199_v36 = vpack.c.bf16 %v505_v31, %v501_v30  ;;  %v504_v38 = vld [vmem:[%s3387_s26 + $0x220] sm:$0xff]  ;;  %v502_v39 = vld [vmem:[%s3387_s26 + $0x210] sm:$0xff] }
  0xd3   : > { %v2455_v40 = vpack.c.bf16 %v507_v33, %v503_v32  ;;  %v506_v41 = vld [vmem:[%s3387_s26 + $0x230] sm:$0xff]  ;;  %v509_v42 = vld [vmem:[%s3387_s26 + $0x248] sm:$0xff]  ;;  %v511_v44 = vld [vmem:[%s3387_s26 + $0x258] sm:$0xff]  ;;  %v2201_v46 = vpack.c.bf16 %v504_v38, %v500_v37 }
  0xd4   : > { %2190 = vmatpush1.bf16.msra.mxu0 %v2189_v10  ;;  %v513_v43 = vld [vmem:[%s3387_s26 + $0x268] sm:$0xff]  ;;  %v515_v45 = vld [vmem:[%s3387_s26 + $0x278] sm:$0xff]  ;;  %v2457_v47 = vpack.c.bf16 %v506_v41, %v502_v39  ;;  %v508_v49 = vld [vmem:[%s3387_s26 + $0x240] sm:$0xff] }
  0xd5   : > { %2446 = vmatpush1.bf16.msra.mxu1 %v2445_v11  ;;  %2192 = vmatprep.subr.bf16.mxu0 %v2191_v12  ;;  %v2203_v48 = vpack.c.bf16 %v513_v43, %v509_v42  ;;  %v512_v50 = vld [vmem:[%s3387_s26 + $0x260] sm:$0xff]  ;;  %v510_v51 = vld [vmem:[%s3387_s26 + $0x250] sm:$0xff]  ;;  %v2459_v52 = vpack.c.bf16 %v515_v45, %v511_v44  ;;  %v517_v54 = vld [vmem:[%s3387_s26 + $0x288] sm:$0xff] }
  0xd6   : > { %2448 = vmatprep.subr.bf16.mxu1 %v2447_v16  ;;  %v514_v53 = vld [vmem:[%s3387_s26 + $0x270] sm:$0xff]  ;;  %v521_v55 = vld [vmem:[%s3387_s26 + $0x2a8] sm:$0xff]  ;;  %v519_v56 = vld [vmem:[%s3387_s26 + $0x298] sm:$0xff]  ;;  %v2205_v58 = vpack.c.bf16 %v512_v50, %v508_v49 }
  0xd7   : > { %v523_v57 = vld [vmem:[%s3387_s26 + $0x2b8] sm:$0xff]  ;;  %v2461_v59 = vpack.c.bf16 %v514_v53, %v510_v51  ;;  %v2207_v60 = vpack.c.bf16 %v521_v55, %v517_v54  ;;  %v516_v61 = vld [vmem:[%s3387_s26 + $0x280] sm:$0xff]  ;;  %v518_v63 = vld [vmem:[%s3387_s26 + $0x290] sm:$0xff] }
  0xd8   : > { %2194 = vmatpush1.bf16.msra.mxu0 %v2193_v22  ;;  %v520_v62 = vld [vmem:[%s3387_s26 + $0x2a0] sm:$0xff]  ;;  %v2463_v0 = vpack.c.bf16 %v523_v57, %v519_v56  ;;  %v522_v1 = vld [vmem:[%s3387_s26 + $0x2b0] sm:$0xff]  ;;  %v525_v2 = vld [vmem:[%s3387_s26 + $0x2c8] sm:$0xff] }
  0xd9   : > { %2450 = vmatpush1.bf16.msra.mxu1 %v2449_v23  ;;  %2196 = vmatprep.subr.bf16.mxu0 %v2195_v24  ;;  %v529_v3 = vld [vmem:[%s3387_s26 + $0x2e8] sm:$0xff]  ;;  %v527_v4 = vld [vmem:[%s3387_s26 + $0x2d8] sm:$0xff]  ;;  %v2209_v6 = vpack.c.bf16 %v520_v62, %v516_v61  ;;  %v524_v7 = vld [vmem:[%s3387_s26 + $0x2c0] sm:$0xff]  ;;  %v2465_v8 = vpack.c.bf16 %v522_v1, %v518_v63 }
  0xda   : > { %2452 = vmatprep.subr.bf16.mxu1 %v2451_v28  ;;  %v531_v5 = vld [vmem:[%s3387_s26 + $0x2f8] sm:$0xff]  ;;  %v2211_v9 = vpack.c.bf16 %v529_v3, %v525_v2  ;;  %v528_v10 = vld [vmem:[%s3387_s26 + $0x2e0] sm:$0xff]  ;;  %v526_v11 = vld [vmem:[%s3387_s26 + $0x2d0] sm:$0xff] }
  0xdb   : > { %v530_v12 = vld [vmem:[%s3387_s26 + $0x2f0] sm:$0xff]  ;;  %v2467_v13 = vpack.c.bf16 %v531_v5, %v527_v4  ;;  %v533_v14 = vld [vmem:[%s3387_s26 + $0x308] sm:$0xff]  ;;  %v535_v17 = vld [vmem:[%s3387_s26 + $0x318] sm:$0xff]  ;;  %v2213_v19 = vpack.c.bf16 %v528_v10, %v524_v7 }
  0xdc   : > { %2198 = vmatpush1.bf16.msra.mxu0 %v2197_v34  ;;  %v537_v15 = vld [vmem:[%s3387_s26 + $0x328] sm:$0xff]  ;;  %v539_v18 = vld [vmem:[%s3387_s26 + $0x338] sm:$0xff]  ;;  %v2469_v20 = vpack.c.bf16 %v530_v12, %v526_v11  ;;  %v532_v22 = vld [vmem:[%s3387_s26 + $0x300] sm:$0xff] }
  0xdd   : > { %2454 = vmatpush1.bf16.msra.mxu1 %v2453_v35  ;;  %2200 = vmatprep.subr.bf16.mxu0 %v2199_v36  ;;  %v429_v16 = vld [vmem:[%s3379_s30 + $0x8] sm:$0xff]  ;;  %v2215_v21 = vpack.c.bf16 %v537_v15, %v533_v14  ;;  %v536_v23 = vld [vmem:[%s3387_s26 + $0x320] sm:$0xff]  ;;  %v534_v24 = vld [vmem:[%s3387_s26 + $0x310] sm:$0xff]  ;;  %v2471_v25 = vpack.c.bf16 %v539_v18, %v535_v17 }
  0xde   : > { %2456 = vmatprep.subr.bf16.mxu1 %v2455_v40  ;;  %1034 = vmatprep.mubr.f32.mxu0 %v429_v16  ;;  %v538_v26 = vld [vmem:[%s3387_s26 + $0x330] sm:$0xff]  ;;  %v541_v27 = vld [vmem:[%s3387_s26 + $0x348] sm:$0xff]  ;;  %v543_v29 = vld [vmem:[%s3387_s26 + $0x358] sm:$0xff]  ;;  %v2217_v31 = vpack.c.bf16 %v536_v23, %v532_v22 }
  0xdf   : > { %1318 = vmatprep.mubr.f32.mxu1 %v429_v16  ;;  %v545_v28 = vld [vmem:[%s3387_s26 + $0x368] sm:$0xff]  ;;  %v547_v30 = vld [vmem:[%s3387_s26 + $0x378] sm:$0xff]  ;;  %v2473_v32 = vpack.c.bf16 %v538_v26, %v534_v24  ;;  %v540_v34 = vld [vmem:[%s3387_s26 + $0x340] sm:$0xff] }
  0xe0   : > { %2202 = vmatpush1.bf16.msra.mxu0 %v2201_v46  ;;  %v2219_v33 = vpack.c.bf16 %v545_v28, %v541_v27  ;;  %v544_v35 = vld [vmem:[%s3387_s26 + $0x360] sm:$0xff]  ;;  %v542_v36 = vld [vmem:[%s3387_s26 + $0x350] sm:$0xff]  ;;  %v2475_v37 = vpack.c.bf16 %v547_v30, %v543_v29  ;;  %v549_v39 = vld [vmem:[%s3387_s26 + $0x388] sm:$0xff] }
  0xe1   : > { %2458 = vmatpush1.bf16.msra.mxu1 %v2457_v47  ;;  %2204 = vmatprep.subr.bf16.mxu0 %v2203_v48  ;;  %v546_v38 = vld [vmem:[%s3387_s26 + $0x370] sm:$0xff]  ;;  %v553_v40 = vld [vmem:[%s3387_s26 + $0x3a8] sm:$0xff]  ;;  %v551_v41 = vld [vmem:[%s3387_s26 + $0x398] sm:$0xff]  ;;  %v2221_v43 = vpack.c.bf16 %v544_v35, %v540_v34 }
  0xe2   : > { %2460 = vmatprep.subr.bf16.mxu1 %v2459_v52  ;;  %v555_v42 = vld [vmem:[%s3387_s26 + $0x3b8] sm:$0xff]  ;;  %v2477_v44 = vpack.c.bf16 %v546_v38, %v542_v36  ;;  %v2223_v45 = vpack.c.bf16 %v553_v40, %v549_v39  ;;  %v548_v46 = vld [vmem:[%s3387_s26 + $0x380] sm:$0xff]  ;;  %v550_v48 = vld [vmem:[%s3387_s26 + $0x390] sm:$0xff] }
  0xe3   : > { %v552_v47 = vld [vmem:[%s3387_s26 + $0x3a0] sm:$0xff]  ;;  %v2479_v49 = vpack.c.bf16 %v555_v42, %v551_v41  ;;  %v554_v50 = vld [vmem:[%s3387_s26 + $0x3b0] sm:$0xff]  ;;  %v557_v51 = vld [vmem:[%s3387_s26 + $0x3c8] sm:$0xff] }
  0xe4   : > { %2206 = vmatpush1.bf16.msra.mxu0 %v2205_v58  ;;  %v561_v52 = vld [vmem:[%s3387_s26 + $0x3e8] sm:$0xff]  ;;  %v559_v53 = vld [vmem:[%s3387_s26 + $0x3d8] sm:$0xff]  ;;  %v2225_v55 = vpack.c.bf16 %v552_v47, %v548_v46  ;;  %v2481_v56 = vpack.c.bf16 %v554_v50, %v550_v48  ;;  %v556_v58 = vld [vmem:[%s3387_s26 + $0x3c0] sm:$0xff] }
  0xe5   : > { %2462 = vmatpush1.bf16.msra.mxu1 %v2461_v59  ;;  %2208 = vmatprep.subr.bf16.mxu0 %v2207_v60  ;;  %v563_v54 = vld [vmem:[%s3387_s26 + $0x3f8] sm:$0xff]  ;;  %v2227_v57 = vpack.c.bf16 %v561_v52, %v557_v51  ;;  %v560_v59 = vld [vmem:[%s3387_s26 + $0x3e0] sm:$0xff]  ;;  %v558_v60 = vld [vmem:[%s3387_s26 + $0x3d0] sm:$0xff] }
  0xe6   : > { %2464 = vmatprep.subr.bf16.mxu1 %v2463_v0  ;;  %v2483_v61 = vpack.c.bf16 %v563_v54, %v559_v53  ;;  %v562_v62 = vld [vmem:[%s3387_s26 + $0x3f0] sm:$0xff]  ;;  %v565_v63 = vld [vmem:[%s3387_s26 + $0x408] sm:$0xff]  ;;  %v567_v1 = vld [vmem:[%s3387_s26 + $0x418] sm:$0xff]  ;;  %v2229_v3 = vpack.c.bf16 %v560_v59, %v556_v58 }
  0xe7   : > { %v569_v0 = vld [vmem:[%s3387_s26 + $0x428] sm:$0xff]  ;;  %v571_v2 = vld [vmem:[%s3387_s26 + $0x438] sm:$0xff]  ;;  %v2485_v4 = vpack.c.bf16 %v562_v62, %v558_v60  ;;  %v568_v7 = vld [vmem:[%s3387_s26 + $0x420] sm:$0xff] }
  0xe8   : > { %2210 = vmatpush1.bf16.msra.mxu0 %v2209_v6  ;;  %v2231_v5 = vpack.c.bf16 %v569_v0, %v565_v63  ;;  %v564_v6 = vld [vmem:[%s3387_s26 + $0x400] sm:$0xff]  ;;  %v570_v10 = vld [vmem:[%s3387_s26 + $0x430] sm:$0xff]  ;;  %v573_v11 = vld [vmem:[%s3387_s26 + $0x448] sm:$0xff] }
  0xe9   : > { %2466 = vmatpush1.bf16.msra.mxu1 %v2465_v8  ;;  %2212 = vmatprep.subr.bf16.mxu0 %v2211_v9  ;;  %v566_v8 = vld [vmem:[%s3387_s26 + $0x410] sm:$0xff]  ;;  %v2487_v9 = vpack.c.bf16 %v571_v2, %v567_v1  ;;  %v577_v12 = vld [vmem:[%s3387_s26 + $0x468] sm:$0xff]  ;;  %v579_v14 = vld [vmem:[%s3387_s26 + $0x478] sm:$0xff]  ;;  %v2233_v16 = vpack.c.bf16 %v568_v7, %v564_v6 }
  0xea   : > { %2468 = vmatprep.subr.bf16.mxu1 %v2467_v13  ;;  %v575_v13 = vld [vmem:[%s3387_s26 + $0x458] sm:$0xff]  ;;  %v428_v15 = vld [vmem:[%s3379_s30] sm:$0xff]  ;;  %v2489_v17 = vpack.c.bf16 %v570_v10, %v566_v8  ;;  %v2235_v18 = vpack.c.bf16 %v577_v12, %v573_v11  ;;  %v578_v23 = vld [vmem:[%s3387_s26 + $0x470] sm:$0xff] }
  0xeb   : > { %v2491_v22 = vpack.c.bf16 %v579_v14, %v575_v13  ;;  %v581_v24 = vld [vmem:[%s3387_s26 + $0x488] sm:$0xff]  ;;  %v583_v26 = vld [vmem:[%s3387_s26 + $0x498] sm:$0xff]  ;;  %v586_v35 = vld [vmem:[%s3387_s26 + $0x4b0] sm:$0xff] }
  0xec   : > { %2214 = vmatpush1.bf16.msra.mxu0 %v2213_v19  ;;  %v572_v19 = vld [vmem:[%s3387_s26 + $0x440] sm:$0xff]  ;;  %v587_v27 = vld [vmem:[%s3387_s26 + $0x4b8] sm:$0xff]  ;;  %v589_v36 = vld [vmem:[%s3387_s26 + $0x4c8] sm:$0xff] }
  0xed   : > { %2470 = vmatpush1.bf16.msra.mxu1 %v2469_v20  ;;  %2216 = vmatprep.subr.bf16.mxu0 %v2215_v21  ;;  %v576_v20 = vld [vmem:[%s3387_s26 + $0x460] sm:$0xff]  ;;  %v574_v21 = vld [vmem:[%s3387_s26 + $0x450] sm:$0xff]  ;;  %v2495_v34 = vpack.c.bf16 %v587_v27, %v583_v26  ;;  %v591_v38 = vld [vmem:[%s3387_s26 + $0x4d8] sm:$0xff] }
  0xee   : > { %2472 = vmatprep.subr.bf16.mxu1 %v2471_v25  ;;  %v585_v25 = vld [vmem:[%s3387_s26 + $0x4a8] sm:$0xff]  ;;  %v2237_v28 = vpack.c.bf16 %v576_v20, %v572_v19  ;;  %v2493_v29 = vpack.c.bf16 %v578_v23, %v574_v21  ;;  %v595_v39 = vld [vmem:[%s3387_s26 + $0x4f8] sm:$0xff]  ;;  %v594_v47 = vld [vmem:[%s3387_s26 + $0x4f0] sm:$0xff] }
  0xef   : > { %v2239_v30 = vpack.c.bf16 %v585_v25, %v581_v24  ;;  %v2499_v46 = vpack.c.bf16 %v595_v39, %v591_v38  ;;  %v597_v48 = vld [vmem:[%s3387_s26 + $0x508] sm:$0xff]  ;;  %v599_v50 = vld [vmem:[%s3387_s26 + $0x518] sm:$0xff]  ;;  %v602_v59 = vld [vmem:[%s3387_s26 + $0x530] sm:$0xff] }
  0xf0   : > { %2218 = vmatpush1.bf16.msra.mxu0 %v2217_v31  ;;  %v580_v31 = vld [vmem:[%s3387_s26 + $0x480] sm:$0xff]  ;;  %v603_v51 = vld [vmem:[%s3387_s26 + $0x538] sm:$0xff]  ;;  %v605_v60 = vld [vmem:[%s3387_s26 + $0x548] sm:$0xff] }
  0xf1   : > { %2474 = vmatpush1.bf16.msra.mxu1 %v2473_v32  ;;  %2220 = vmatprep.subr.bf16.mxu0 %v2219_v33  ;;  %v584_v32 = vld [vmem:[%s3387_s26 + $0x4a0] sm:$0xff]  ;;  %v582_v33 = vld [vmem:[%s3387_s26 + $0x490] sm:$0xff]  ;;  %v2503_v58 = vpack.c.bf16 %v603_v51, %v599_v50  ;;  %v607_v62 = vld [vmem:[%s3387_s26 + $0x558] sm:$0xff] }
  0xf2   : > { %2476 = vmatprep.subr.bf16.mxu1 %v2475_v37  ;;  %v593_v37 = vld [vmem:[%s3387_s26 + $0x4e8] sm:$0xff]  ;;  %v2241_v40 = vpack.c.bf16 %v584_v32, %v580_v31  ;;  %v2497_v41 = vpack.c.bf16 %v586_v35, %v582_v33  ;;  %v611_v63 = vld [vmem:[%s3387_s26 + $0x578] sm:$0xff]  ;;  %v610_v7 = vld [vmem:[%s3387_s26 + $0x570] sm:$0xff] }
  0xf3   : > { %v2243_v42 = vpack.c.bf16 %v593_v37, %v589_v36  ;;  %v2507_v6 = vpack.c.bf16 %v611_v63, %v607_v62  ;;  %v613_v8 = vld [vmem:[%s3387_s26 + $0x588] sm:$0xff]  ;;  %v615_v10 = vld [vmem:[%s3387_s26 + $0x598] sm:$0xff]  ;;  %v612_v13 = vld [vmem:[%s3387_s26 + $0x580] sm:$0xff] }
  0xf4   : > { %2222 = vmatpush1.bf16.msra.mxu0 %v2221_v43  ;;  %v588_v43 = vld [vmem:[%s3387_s26 + $0x4c0] sm:$0xff]  ;;  %v619_v11 = vld [vmem:[%s3387_s26 + $0x5b8] sm:$0xff]  ;;  %v621_v20 = vld [vmem:[%s3387_s26 + $0x5c8] sm:$0xff] }
  0xf5   : > { %2478 = vmatpush1.bf16.msra.mxu1 %v2477_v44  ;;  %2224 = vmatprep.subr.bf16.mxu0 %v2223_v45  ;;  %v592_v44 = vld [vmem:[%s3387_s26 + $0x4e0] sm:$0xff]  ;;  %v590_v45 = vld [vmem:[%s3387_s26 + $0x4d0] sm:$0xff]  ;;  %v2511_v19 = vpack.c.bf16 %v619_v11, %v615_v10  ;;  %v625_v21 = vld [vmem:[%s3387_s26 + $0x5e8] sm:$0xff] }
  0xf6   : > { %2480 = vmatprep.subr.bf16.mxu1 %v2479_v49  ;;  %v601_v49 = vld [vmem:[%s3387_s26 + $0x528] sm:$0xff]  ;;  %v2245_v52 = vpack.c.bf16 %v592_v44, %v588_v43  ;;  %v2501_v53 = vpack.c.bf16 %v594_v47, %v590_v45  ;;  %v623_v23 = vld [vmem:[%s3387_s26 + $0x5d8] sm:$0xff]  ;;  %v2259_v27 = vpack.c.bf16 %v625_v21, %v621_v20  ;;  %v626_v32 = vld [vmem:[%s3387_s26 + $0x5f0] sm:$0xff] }
  0xf7   : > { %v2247_v54 = vpack.c.bf16 %v601_v49, %v597_v48  ;;  %v627_v24 = vld [vmem:[%s3387_s26 + $0x5f8] sm:$0xff]  ;;  %v629_v33 = vld [vmem:[%s3387_s26 + $0x608] sm:$0xff]  ;;  %v634_v44 = vld [vmem:[%s3387_s26 + $0x630] sm:$0xff] }
  0xf8   : > { %2226 = vmatpush1.bf16.msra.mxu0 %v2225_v55  ;;  %v596_v55 = vld [vmem:[%s3387_s26 + $0x500] sm:$0xff]  ;;  %v2515_v31 = vpack.c.bf16 %v627_v24, %v623_v23  ;;  %v631_v35 = vld [vmem:[%s3387_s26 + $0x618] sm:$0xff]  ;;  %v637_v45 = vld [vmem:[%s3387_s26 + $0x648] sm:$0xff] }
  0xf9   : > { %2482 = vmatpush1.bf16.msra.mxu1 %v2481_v56  ;;  %2228 = vmatprep.subr.bf16.mxu0 %v2227_v57  ;;  %v600_v56 = vld [vmem:[%s3387_s26 + $0x520] sm:$0xff]  ;;  %v598_v57 = vld [vmem:[%s3387_s26 + $0x510] sm:$0xff]  ;;  %v635_v36 = vld [vmem:[%s3387_s26 + $0x638] sm:$0xff] }
  0xfa   : > { %2484 = vmatprep.subr.bf16.mxu1 %v2483_v61  ;;  %v609_v61 = vld [vmem:[%s3387_s26 + $0x568] sm:$0xff]  ;;  %v2249_v0 = vpack.c.bf16 %v600_v56, %v596_v55  ;;  %v2505_v1 = vpack.c.bf16 %v602_v59, %v598_v57  ;;  %v2519_v43 = vpack.c.bf16 %v635_v36, %v631_v35  ;;  %v639_v47 = vld [vmem:[%s3387_s26 + $0x658] sm:$0xff]  ;;  %v642_v56 = vld [vmem:[%s3387_s26 + $0x670] sm:$0xff] }
  0xfb   : > { %v2251_v2 = vpack.c.bf16 %v609_v61, %v605_v60  ;;  %v643_v48 = vld [vmem:[%s3387_s26 + $0x678] sm:$0xff]  ;;  %v645_v57 = vld [vmem:[%s3387_s26 + $0x688] sm:$0xff]  ;;  %v660_v24 = vld [vmem:[%s3387_s26 + $0x700] sm:$0xff] }
  0xfc   : > { %2230 = vmatpush1.bf16.msra.mxu0 %v2229_v3  ;;  %v604_v3 = vld [vmem:[%s3387_s26 + $0x540] sm:$0xff]  ;;  %v2523_v55 = vpack.c.bf16 %v643_v48, %v639_v47  ;;  %v647_v59 = vld [vmem:[%s3387_s26 + $0x698] sm:$0xff] }
  0xfd   : > { %2486 = vmatpush1.bf16.msra.mxu1 %v2485_v4  ;;  %2232 = vmatprep.subr.bf16.mxu0 %v2231_v5  ;;  %v608_v4 = vld [vmem:[%s3387_s26 + $0x560] sm:$0xff]  ;;  %v606_v5 = vld [vmem:[%s3387_s26 + $0x550] sm:$0xff]  ;;  %v651_v60 = vld [vmem:[%s3387_s26 + $0x6b8] sm:$0xff] }
  0xfe   : > { %2488 = vmatprep.subr.bf16.mxu1 %v2487_v9  ;;  %v617_v9 = vld [vmem:[%s3387_s26 + $0x5a8] sm:$0xff]  ;;  %v2253_v12 = vpack.c.bf16 %v608_v4, %v604_v3  ;;  %v2509_v14 = vpack.c.bf16 %v610_v7, %v606_v5  ;;  %v2527_v3 = vpack.c.bf16 %v651_v60, %v647_v59  ;;  %v650_v4 = vld [vmem:[%s3387_s26 + $0x6b0] sm:$0xff]  ;;  %v655_v7 = vld [vmem:[%s3387_s26 + $0x6d8] sm:$0xff] }
  0xff   : > { %1035 = vmatmul.mubr.f32.vlgmr.msra.gmra.mrb[0].mxu0 %v428_v15  ;;  %v653_v5 = vld [vmem:[%s3387_s26 + $0x6c8] sm:$0xff]  ;;  %v667_v20 = vld [vmem:[%s3387_s26 + $0x738] sm:$0xff]  ;;  %v668_v36 = vld [vmem:[%s3387_s26 + $0x740] sm:$0xff] }
 0x100   : > { %2234 = vmatpush1.bf16.msra.mxu0 %v2233_v16  ;;  %1319 = vmatmul.mubr.f32.vlgmr.msra.gmra.mrb[0].mxu1 %v428_v15  ;;  %v2255_v15 = vpack.c.bf16 %v617_v9, %v613_v8  ;;  %v616_v16 = vld [vmem:[%s3387_s26 + $0x5a0] sm:$0xff]  ;;  %v659_v8 = vld [vmem:[%s3387_s26 + $0x6f8] sm:$0xff] }
 0x101   : > { %2490 = vmatpush1.bf16.msra.mxu1 %v2489_v17  ;;  %2236 = vmatprep.subr.bf16.mxu0 %v2235_v18  ;;  %v614_v17 = vld [vmem:[%s3387_s26 + $0x590] sm:$0xff]  ;;  %v2257_v25 = vpack.c.bf16 %v616_v16, %v612_v13  ;;  %v656_v13 = vld [vmem:[%s3387_s26 + $0x6e0] sm:$0xff] }
 0x102   : > { %2492 = vmatprep.subr.bf16.mxu1 %v2491_v22  ;;  %v618_v18 = vld [vmem:[%s3387_s26 + $0x5b0] sm:$0xff]  ;;  %v431_v22 = vld [vmem:[%s3379_s30 + $0x18] sm:$0xff]  ;;  %v676_v48 = vld [vmem:[%s3387_s26 + $0x780] sm:$0xff] }
 0x103   : > { %1105 = vmatprep.mubr.f32.mxu0 %v431_v22  ;;  %1389 = vmatprep.mubr.f32.mxu1 %v431_v22  ;;  %v2513_v26 = vpack.c.bf16 %v618_v18, %v614_v17  ;;  %v658_v16 = vld [vmem:[%s3387_s26 + $0x6f0] sm:$0xff]  ;;  %v661_v17 = vld [vmem:[%s3387_s26 + $0x708] sm:$0xff]  ;;  %v684_v60 = vld [vmem:[%s3387_s26 + $0x7c0] sm:$0xff] }
 0x104   : > { %2238 = vmatpush1.bf16.msra.mxu0 %v2237_v28  ;;  %v620_v28 = vld [vmem:[%s3387_s26 + $0x5c0] sm:$0xff]  ;;  %v665_v18 = vld [vmem:[%s3387_s26 + $0x728] sm:$0xff] }
 0x105   : > { %2494 = vmatpush1.bf16.msra.mxu1 %v2493_v29  ;;  %2240 = vmatprep.subr.bf16.mxu0 %v2239_v30  ;;  %v624_v29 = vld [vmem:[%s3387_s26 + $0x5e0] sm:$0xff]  ;;  %v622_v30 = vld [vmem:[%s3387_s26 + $0x5d0] sm:$0xff]  ;;  %v2279_v23 = vpack.c.bf16 %v665_v18, %v661_v17 }
 0x106   : > { %2496 = vmatprep.subr.bf16.mxu1 %v2495_v34  ;;  %v633_v34 = vld [vmem:[%s3387_s26 + $0x628] sm:$0xff]  ;;  %v2261_v37 = vpack.c.bf16 %v624_v29, %v620_v28  ;;  %v2517_v38 = vpack.c.bf16 %v626_v32, %v622_v30  ;;  %v666_v28 = vld [vmem:[%s3387_s26 + $0x730] sm:$0xff]  ;;  %v675_v32 = vld [vmem:[%s3387_s26 + $0x778] sm:$0xff] }
 0x107   : > { %v2263_v39 = vpack.c.bf16 %v633_v34, %v629_v33  ;;  %v669_v29 = vld [vmem:[%s3387_s26 + $0x748] sm:$0xff]  ;;  %v430_v17 = vld [vmem:[%s3379_s30 + $0x10] sm:$0xff] }
 0x108   : > { %2242 = vmatpush1.bf16.msra.mxu0 %v2241_v40  ;;  %v628_v40 = vld [vmem:[%s3387_s26 + $0x600] sm:$0xff]  ;;  %v673_v30 = vld [vmem:[%s3387_s26 + $0x768] sm:$0xff] }
 0x109   : > { %2498 = vmatpush1.bf16.msra.mxu1 %v2497_v41  ;;  %2244 = vmatprep.subr.bf16.mxu0 %v2243_v42  ;;  %v632_v41 = vld [vmem:[%s3387_s26 + $0x620] sm:$0xff]  ;;  %v630_v42 = vld [vmem:[%s3387_s26 + $0x610] sm:$0xff]  ;;  %v2283_v35 = vpack.c.bf16 %v673_v30, %v669_v29  ;;  %v715_v29 = vld [vmem:[%s3387_s26 + $0x8b8] sm:$0xff] }
 0x10a   : > { %2500 = vmatprep.subr.bf16.mxu1 %v2499_v46  ;;  %v641_v46 = vld [vmem:[%s3387_s26 + $0x668] sm:$0xff]  ;;  %v2265_v49 = vpack.c.bf16 %v632_v41, %v628_v40  ;;  %v2521_v50 = vpack.c.bf16 %v634_v44, %v630_v42  ;;  %v674_v40 = vld [vmem:[%s3387_s26 + $0x770] sm:$0xff]  ;;  %v683_v44 = vld [vmem:[%s3387_s26 + $0x7b8] sm:$0xff] }
 0x10b   : > { %v2267_v51 = vpack.c.bf16 %v641_v46, %v637_v45  ;;  %v677_v41 = vld [vmem:[%s3387_s26 + $0x788] sm:$0xff] }
 0x10c   : > { %2246 = vmatpush1.bf16.msra.mxu0 %v2245_v52  ;;  %v636_v52 = vld [vmem:[%s3387_s26 + $0x640] sm:$0xff]  ;;  %v681_v42 = vld [vmem:[%s3387_s26 + $0x7a8] sm:$0xff] }
 0x10d   : > { %2502 = vmatpush1.bf16.msra.mxu1 %v2501_v53  ;;  %2248 = vmatprep.subr.bf16.mxu0 %v2247_v54  ;;  %v640_v53 = vld [vmem:[%s3387_s26 + $0x660] sm:$0xff]  ;;  %v638_v54 = vld [vmem:[%s3387_s26 + $0x650] sm:$0xff]  ;;  %v2287_v47 = vpack.c.bf16 %v681_v42, %v677_v41  ;;  %v433_v30 = vld [vmem:[%s3379_s30 + $0x28] sm:$0xff] }
 0x10e   : > { %2504 = vmatprep.subr.bf16.mxu1 %v2503_v58  ;;  %v649_v58 = vld [vmem:[%s3387_s26 + $0x6a8] sm:$0xff]  ;;  %v2269_v61 = vpack.c.bf16 %v640_v53, %v636_v52  ;;  %v2525_v62 = vpack.c.bf16 %v642_v56, %v638_v54  ;;  %v682_v52 = vld [vmem:[%s3387_s26 + $0x7b0] sm:$0xff]  ;;  %v691_v56 = vld [vmem:[%s3387_s26 + $0x7f8] sm:$0xff] }
 0x10f   : > { %v2271_v63 = vpack.c.bf16 %v649_v58, %v645_v57  ;;  %v685_v53 = vld [vmem:[%s3387_s26 + $0x7c8] sm:$0xff]  ;;  %v719_v41 = vld [vmem:[%s3387_s26 + $0x8d8] sm:$0xff] }
 0x110   : > { %2250 = vmatpush1.bf16.msra.mxu0 %v2249_v0  ;;  %v644_v0 = vld [vmem:[%s3387_s26 + $0x680] sm:$0xff]  ;;  %v689_v54 = vld [vmem:[%s3387_s26 + $0x7e8] sm:$0xff]  ;;  %v723_v42 = vld [vmem:[%s3387_s26 + $0x8f8] sm:$0xff] }
 0x111   : > { %2506 = vmatpush1.bf16.msra.mxu1 %v2505_v1  ;;  %2252 = vmatprep.subr.bf16.mxu0 %v2251_v2  ;;  %v648_v1 = vld [vmem:[%s3387_s26 + $0x6a0] sm:$0xff]  ;;  %v646_v2 = vld [vmem:[%s3387_s26 + $0x690] sm:$0xff]  ;;  %v2291_v59 = vpack.c.bf16 %v689_v54, %v685_v53  ;;  %v727_v53 = vld [vmem:[%s3387_s26 + $0x918] sm:$0xff] }
 0x112   : > { %2508 = vmatprep.subr.bf16.mxu1 %v2507_v6  ;;  %v657_v6 = vld [vmem:[%s3387_s26 + $0x6e8] sm:$0xff]  ;;  %v2273_v9 = vpack.c.bf16 %v648_v1, %v644_v0  ;;  %v2529_v10 = vpack.c.bf16 %v650_v4, %v646_v2  ;;  %v690_v0 = vld [vmem:[%s3387_s26 + $0x7f0] sm:$0xff]  ;;  %v699_v4 = vld [vmem:[%s3387_s26 + $0x838] sm:$0xff] }
 0x113   : > { %v2275_v11 = vpack.c.bf16 %v657_v6, %v653_v5  ;;  %v693_v1 = vld [vmem:[%s3387_s26 + $0x808] sm:$0xff]  ;;  %v731_v54 = vld [vmem:[%s3387_s26 + $0x938] sm:$0xff] }
 0x114   : > { %2254 = vmatpush1.bf16.msra.mxu0 %v2253_v12  ;;  %v652_v12 = vld [vmem:[%s3387_s26 + $0x6c0] sm:$0xff]  ;;  %v697_v2 = vld [vmem:[%s3387_s26 + $0x828] sm:$0xff] }
 0x115   : > { %2510 = vmatpush1.bf16.msra.mxu1 %v2509_v14  ;;  %2256 = vmatprep.subr.bf16.mxu0 %v2255_v15  ;;  %v654_v14 = vld [vmem:[%s3387_s26 + $0x6d0] sm:$0xff]  ;;  %v2531_v15 = vpack.c.bf16 %v659_v8, %v655_v7  ;;  %v2277_v21 = vpack.c.bf16 %v656_v13, %v652_v12  ;;  %v2295_v7 = vpack.c.bf16 %v697_v2, %v693_v1  ;;  %v692_v8 = vld [vmem:[%s3387_s26 + $0x800] sm:$0xff]  ;;  %v701_v13 = vld [vmem:[%s3387_s26 + $0x848] sm:$0xff] }
 0x116   : > { %2512 = vmatprep.subr.bf16.mxu1 %v2511_v19  ;;  %v663_v19 = vld [vmem:[%s3387_s26 + $0x718] sm:$0xff]  ;;  %v2533_v22 = vpack.c.bf16 %v658_v16, %v654_v14  ;;  %v698_v12 = vld [vmem:[%s3387_s26 + $0x830] sm:$0xff]  ;;  %v705_v14 = vld [vmem:[%s3387_s26 + $0x868] sm:$0xff] }
 0x117   : > { %v707_v16 = vld [vmem:[%s3387_s26 + $0x878] sm:$0xff] }
 0x118   : > { %2258 = vmatpush1.bf16.msra.mxu0 %v2257_v25  ;;  %v664_v25 = vld [vmem:[%s3387_s26 + $0x720] sm:$0xff]  ;;  %v735_v1 = vld [vmem:[%s3387_s26 + $0x958] sm:$0xff] }
 0x119   : > { %2514 = vmatpush1.bf16.msra.mxu1 %v2513_v26  ;;  %2260 = vmatprep.subr.bf16.mxu0 %v2259_v27  ;;  %v662_v26 = vld [vmem:[%s3387_s26 + $0x710] sm:$0xff]  ;;  %v2535_v27 = vpack.c.bf16 %v667_v20, %v663_v19  ;;  %v2281_v33 = vpack.c.bf16 %v664_v25, %v660_v24  ;;  %v2299_v20 = vpack.c.bf16 %v705_v14, %v701_v13  ;;  %v739_v2 = vld [vmem:[%s3387_s26 + $0x978] sm:$0xff] }
 0x11a   : > { %2516 = vmatprep.subr.bf16.mxu1 %v2515_v31  ;;  %v671_v31 = vld [vmem:[%s3387_s26 + $0x758] sm:$0xff]  ;;  %v2537_v34 = vpack.c.bf16 %v666_v28, %v662_v26  ;;  %v706_v25 = vld [vmem:[%s3387_s26 + $0x870] sm:$0xff]  ;;  %v709_v26 = vld [vmem:[%s3387_s26 + $0x888] sm:$0xff] }
 0x11b   : > { %v711_v28 = vld [vmem:[%s3387_s26 + $0x898] sm:$0xff] }
 0x11c   : > { %2262 = vmatpush1.bf16.msra.mxu0 %v2261_v37  ;;  %v672_v37 = vld [vmem:[%s3387_s26 + $0x760] sm:$0xff]  ;;  %v743_v13 = vld [vmem:[%s3387_s26 + $0x998] sm:$0xff] }
 0x11d   : > { %2518 = vmatpush1.bf16.msra.mxu1 %v2517_v38  ;;  %2264 = vmatprep.subr.bf16.mxu0 %v2263_v39  ;;  %v670_v38 = vld [vmem:[%s3387_s26 + $0x750] sm:$0xff]  ;;  %v2539_v39 = vpack.c.bf16 %v675_v32, %v671_v31  ;;  %v2285_v45 = vpack.c.bf16 %v672_v37, %v668_v36  ;;  %v2559_v37 = vpack.c.bf16 %v715_v29, %v711_v28  ;;  %v747_v14 = vld [vmem:[%s3387_s26 + $0x9b8] sm:$0xff] }
 0x11e   : > { %2520 = vmatprep.subr.bf16.mxu1 %v2519_v43  ;;  %v679_v43 = vld [vmem:[%s3387_s26 + $0x798] sm:$0xff]  ;;  %v2541_v46 = vpack.c.bf16 %v674_v40, %v670_v38  ;;  %v710_v36 = vld [vmem:[%s3387_s26 + $0x890] sm:$0xff]  ;;  %v721_v40 = vld [vmem:[%s3387_s26 + $0x8e8] sm:$0xff] }
 0x11f   : > { %v714_v38 = vld [vmem:[%s3387_s26 + $0x8b0] sm:$0xff] }
 0x120   : > { %2266 = vmatpush1.bf16.msra.mxu0 %v2265_v49  ;;  %v680_v49 = vld [vmem:[%s3387_s26 + $0x7a0] sm:$0xff] }
 0x121   : > { %2522 = vmatpush1.bf16.msra.mxu1 %v2521_v50  ;;  %2268 = vmatprep.subr.bf16.mxu0 %v2267_v51  ;;  %v678_v50 = vld [vmem:[%s3387_s26 + $0x790] sm:$0xff]  ;;  %v2543_v51 = vpack.c.bf16 %v683_v44, %v679_v43  ;;  %v2289_v57 = vpack.c.bf16 %v680_v49, %v676_v48  ;;  %v2561_v44 = vpack.c.bf16 %v714_v38, %v710_v36  ;;  %v761_v36 = vld [vmem:[%s3387_s26 + $0xa28] sm:$0xff]  ;;  %v763_v38 = vld [vmem:[%s3387_s26 + $0xa38] sm:$0xff] }
 0x122   : > { %2524 = vmatprep.subr.bf16.mxu1 %v2523_v55  ;;  %v687_v55 = vld [vmem:[%s3387_s26 + $0x7d8] sm:$0xff]  ;;  %v2545_v58 = vpack.c.bf16 %v682_v52, %v678_v50  ;;  %v718_v48 = vld [vmem:[%s3387_s26 + $0x8d0] sm:$0xff]  ;;  %v2563_v49 = vpack.c.bf16 %v723_v42, %v719_v41  ;;  %v729_v52 = vld [vmem:[%s3387_s26 + $0x928] sm:$0xff] }
 0x123   : > { %v722_v50 = vld [vmem:[%s3387_s26 + $0x8f0] sm:$0xff]  ;;  %v756_v42 = vld [vmem:[%s3387_s26 + $0xa00] sm:$0xff] }
 0x124   : > { %2270 = vmatpush1.bf16.msra.mxu0 %v2269_v61  ;;  %v688_v61 = vld [vmem:[%s3387_s26 + $0x7e0] sm:$0xff] }
 0x125   : > { %2526 = vmatpush1.bf16.msra.mxu1 %v2525_v62  ;;  %2272 = vmatprep.subr.bf16.mxu0 %v2271_v63  ;;  %v686_v62 = vld [vmem:[%s3387_s26 + $0x7d0] sm:$0xff]  ;;  %v2547_v63 = vpack.c.bf16 %v691_v56, %v687_v55  ;;  %v2293_v5 = vpack.c.bf16 %v688_v61, %v684_v60  ;;  %v2565_v56 = vpack.c.bf16 %v722_v50, %v718_v48  ;;  %v769_v48 = vld [vmem:[%s3387_s26 + $0xa68] sm:$0xff]  ;;  %v771_v50 = vld [vmem:[%s3387_s26 + $0xa78] sm:$0xff] }
 0x126   : > { %2528 = vmatprep.subr.bf16.mxu1 %v2527_v3  ;;  %v695_v3 = vld [vmem:[%s3387_s26 + $0x818] sm:$0xff]  ;;  %v2549_v6 = vpack.c.bf16 %v690_v0, %v686_v62  ;;  %v726_v60 = vld [vmem:[%s3387_s26 + $0x910] sm:$0xff]  ;;  %v2567_v61 = vpack.c.bf16 %v731_v54, %v727_v53  ;;  %v737_v0 = vld [vmem:[%s3387_s26 + $0x968] sm:$0xff] }
 0x127   : > { %v730_v62 = vld [vmem:[%s3387_s26 + $0x930] sm:$0xff]  ;;  %v764_v54 = vld [vmem:[%s3387_s26 + $0xa40] sm:$0xff] }
 0x128   : > { %2274 = vmatpush1.bf16.msra.mxu0 %v2273_v9  ;;  %v696_v9 = vld [vmem:[%s3387_s26 + $0x820] sm:$0xff] }
 0x129   : > { %2530 = vmatpush1.bf16.msra.mxu1 %v2529_v10  ;;  %2276 = vmatprep.subr.bf16.mxu0 %v2275_v11  ;;  %v694_v10 = vld [vmem:[%s3387_s26 + $0x810] sm:$0xff]  ;;  %v2551_v11 = vpack.c.bf16 %v699_v4, %v695_v3  ;;  %v2297_v18 = vpack.c.bf16 %v696_v9, %v692_v8  ;;  %v2569_v4 = vpack.c.bf16 %v730_v62, %v726_v60  ;;  %v777_v60 = vld [vmem:[%s3387_s26 + $0xaa8] sm:$0xff]  ;;  %v779_v62 = vld [vmem:[%s3387_s26 + $0xab8] sm:$0xff] }
 0x12a   : > { %2532 = vmatprep.subr.bf16.mxu1 %v2531_v15  ;;  %v703_v15 = vld [vmem:[%s3387_s26 + $0x858] sm:$0xff]  ;;  %v2553_v19 = vpack.c.bf16 %v698_v12, %v694_v10  ;;  %v734_v8 = vld [vmem:[%s3387_s26 + $0x950] sm:$0xff]  ;;  %v2571_v9 = vpack.c.bf16 %v739_v2, %v735_v1  ;;  %v745_v12 = vld [vmem:[%s3387_s26 + $0x9a8] sm:$0xff] }
 0x12b   : > { %v2555_v24 = vpack.c.bf16 %v707_v16, %v703_v15  ;;  %v738_v10 = vld [vmem:[%s3387_s26 + $0x970] sm:$0xff]  ;;  %v772_v2 = vld [vmem:[%s3387_s26 + $0xa80] sm:$0xff] }
 0x12c   : > { %2278 = vmatpush1.bf16.msra.mxu0 %v2277_v21  ;;  %v700_v21 = vld [vmem:[%s3387_s26 + $0x840] sm:$0xff]  ;;  %v2573_v16 = vpack.c.bf16 %v738_v10, %v734_v8  ;;  %v785_v8 = vld [vmem:[%s3387_s26 + $0xae8] sm:$0xff]  ;;  %v787_v10 = vld [vmem:[%s3387_s26 + $0xaf8] sm:$0xff] }
 0x12d   : > { %2534 = vmatpush1.bf16.msra.mxu1 %v2533_v22  ;;  %2280 = vmatprep.subr.bf16.mxu0 %v2279_v23  ;;  %v704_v22 = vld [vmem:[%s3387_s26 + $0x860] sm:$0xff]  ;;  %v702_v23 = vld [vmem:[%s3387_s26 + $0x850] sm:$0xff] }
 0x12e   : > { %2536 = vmatprep.subr.bf16.mxu1 %v2535_v27  ;;  %v713_v27 = vld [vmem:[%s3387_s26 + $0x8a8] sm:$0xff]  ;;  %v2301_v31 = vpack.c.bf16 %v704_v22, %v700_v21  ;;  %v2557_v32 = vpack.c.bf16 %v706_v25, %v702_v23  ;;  %v2575_v21 = vpack.c.bf16 %v747_v14, %v743_v13  ;;  %v746_v22 = vld [vmem:[%s3387_s26 + $0x9b0] sm:$0xff]  ;;  %v751_v25 = vld [vmem:[%s3387_s26 + $0x9d8] sm:$0xff] }
 0x12f   : > { %v749_v23 = vld [vmem:[%s3387_s26 + $0x9c8] sm:$0xff]  ;;  %v780_v14 = vld [vmem:[%s3387_s26 + $0xac0] sm:$0xff] }
 0x130   : > { %2282 = vmatpush1.bf16.msra.mxu0 %v2281_v33  ;;  %v2303_v33 = vpack.c.bf16 %v713_v27, %v709_v26  ;;  %v755_v26 = vld [vmem:[%s3387_s26 + $0x9f8] sm:$0xff] }
 0x131   : > { %2538 = vmatpush1.bf16.msra.mxu1 %v2537_v34  ;;  %2284 = vmatprep.subr.bf16.mxu0 %v2283_v35  ;;  %v708_v34 = vld [vmem:[%s3387_s26 + $0x880] sm:$0xff] }
 0x132   : > { %2540 = vmatprep.subr.bf16.mxu1 %v2539_v39  ;;  %v712_v35 = vld [vmem:[%s3387_s26 + $0x8a0] sm:$0xff]  ;;  %v717_v39 = vld [vmem:[%s3387_s26 + $0x8c8] sm:$0xff] }
 0x133   : > { %v2305_v43 = vpack.c.bf16 %v712_v35, %v708_v34  ;;  %v754_v34 = vld [vmem:[%s3387_s26 + $0x9f0] sm:$0xff]  ;;  %v757_v35 = vld [vmem:[%s3387_s26 + $0xa08] sm:$0xff] }
 0x134   : > { %2286 = vmatpush1.bf16.msra.mxu0 %v2285_v45  ;;  %v2307_v45 = vpack.c.bf16 %v721_v40, %v717_v39  ;;  %v2327_v41 = vpack.c.bf16 %v761_v36, %v757_v35 }
 0x135   : > { %2542 = vmatpush1.bf16.msra.mxu1 %v2541_v46  ;;  %2288 = vmatprep.subr.bf16.mxu0 %v2287_v47  ;;  %v716_v46 = vld [vmem:[%s3387_s26 + $0x8c0] sm:$0xff] }
 0x136   : > { %2544 = vmatprep.subr.bf16.mxu1 %v2543_v51  ;;  %v720_v47 = vld [vmem:[%s3387_s26 + $0x8e0] sm:$0xff]  ;;  %v725_v51 = vld [vmem:[%s3387_s26 + $0x908] sm:$0xff] }
 0x137   : > { %v2309_v55 = vpack.c.bf16 %v720_v47, %v716_v46  ;;  %v762_v46 = vld [vmem:[%s3387_s26 + $0xa30] sm:$0xff]  ;;  %v765_v47 = vld [vmem:[%s3387_s26 + $0xa48] sm:$0xff] }
 0x138   : > { %2290 = vmatpush1.bf16.msra.mxu0 %v2289_v57  ;;  %v2311_v57 = vpack.c.bf16 %v729_v52, %v725_v51  ;;  %v2331_v53 = vpack.c.bf16 %v769_v48, %v765_v47 }
 0x139   : > { %2546 = vmatpush1.bf16.msra.mxu1 %v2545_v58  ;;  %2292 = vmatprep.subr.bf16.mxu0 %v2291_v59  ;;  %v724_v58 = vld [vmem:[%s3387_s26 + $0x900] sm:$0xff] }
 0x13a   : > { %2548 = vmatprep.subr.bf16.mxu1 %v2547_v63  ;;  %v728_v59 = vld [vmem:[%s3387_s26 + $0x920] sm:$0xff]  ;;  %v733_v63 = vld [vmem:[%s3387_s26 + $0x948] sm:$0xff] }
 0x13b   : > { %v2313_v3 = vpack.c.bf16 %v728_v59, %v724_v58  ;;  %v770_v58 = vld [vmem:[%s3387_s26 + $0xa70] sm:$0xff]  ;;  %v773_v59 = vld [vmem:[%s3387_s26 + $0xa88] sm:$0xff] }
 0x13c   : > { %2294 = vmatpush1.bf16.msra.mxu0 %v2293_v5  ;;  %v2315_v5 = vpack.c.bf16 %v737_v0, %v733_v63  ;;  %v2335_v1 = vpack.c.bf16 %v777_v60, %v773_v59 }
 0x13d   : > { %2550 = vmatpush1.bf16.msra.mxu1 %v2549_v6  ;;  %2296 = vmatprep.subr.bf16.mxu0 %v2295_v7  ;;  %v732_v6 = vld [vmem:[%s3387_s26 + $0x940] sm:$0xff] }
 0x13e   : > { %2552 = vmatprep.subr.bf16.mxu1 %v2551_v11  ;;  %v736_v7 = vld [vmem:[%s3387_s26 + $0x960] sm:$0xff]  ;;  %v741_v11 = vld [vmem:[%s3387_s26 + $0x988] sm:$0xff] }
 0x13f   : > { %1106 = vmatmul.mubr.f32.vlgmr.msra.gmra.mrb[0].mxu0 %v430_v17  ;;  %v2317_v15 = vpack.c.bf16 %v736_v7, %v732_v6  ;;  %v778_v6 = vld [vmem:[%s3387_s26 + $0xab0] sm:$0xff]  ;;  %v781_v7 = vld [vmem:[%s3387_s26 + $0xac8] sm:$0xff] }
 0x140   : > { %2298 = vmatpush1.bf16.msra.mxu0 %v2297_v18  ;;  %1390 = vmatmul.mubr.f32.vlgmr.msra.gmra.mrb[0].mxu1 %v430_v17  ;;  %v2319_v17 = vpack.c.bf16 %v745_v12, %v741_v11  ;;  %v740_v18 = vld [vmem:[%s3387_s26 + $0x980] sm:$0xff]  ;;  %v2339_v13 = vpack.c.bf16 %v785_v8, %v781_v7 }
 0x141   : > { %2554 = vmatpush1.bf16.msra.mxu1 %v2553_v19  ;;  %2300 = vmatprep.subr.bf16.mxu0 %v2299_v20  ;;  %v744_v19 = vld [vmem:[%s3387_s26 + $0x9a0] sm:$0xff]  ;;  %v742_v20 = vld [vmem:[%s3387_s26 + $0x990] sm:$0xff] }
 0x142   : > { %2556 = vmatprep.subr.bf16.mxu1 %v2555_v24  ;;  %1176 = vmatprep.mubr.f32.mxu0 %v433_v30  ;;  %v753_v24 = vld [vmem:[%s3387_s26 + $0x9e8] sm:$0xff]  ;;  %v2321_v27 = vpack.c.bf16 %v744_v19, %v740_v18  ;;  %v2577_v28 = vpack.c.bf16 %v746_v22, %v742_v20  ;;  %v786_v18 = vld [vmem:[%s3387_s26 + $0xaf0] sm:$0xff]  ;;  %v795_v22 = vld [vmem:[%s3387_s26 + $0xb38] sm:$0xff] }
 0x143   : > { %1460 = vmatprep.mubr.f32.mxu1 %v433_v30  ;;  %v2323_v29 = vpack.c.bf16 %v753_v24, %v749_v23  ;;  %v748_v30 = vld [vmem:[%s3387_s26 + $0x9c0] sm:$0xff]  ;;  %v789_v19 = vld [vmem:[%s3387_s26 + $0xb08] sm:$0xff] }
 0x144   : > { %2302 = vmatpush1.bf16.msra.mxu0 %v2301_v31  ;;  %v752_v31 = vld [vmem:[%s3387_s26 + $0x9e0] sm:$0xff]  ;;  %v793_v20 = vld [vmem:[%s3387_s26 + $0xb28] sm:$0xff] }
 0x145   : > { %2558 = vmatpush1.bf16.msra.mxu1 %v2557_v32  ;;  %2304 = vmatprep.subr.bf16.mxu0 %v2303_v33  ;;  %v750_v32 = vld [vmem:[%s3387_s26 + $0x9d0] sm:$0xff]  ;;  %v2579_v33 = vpack.c.bf16 %v755_v26, %v751_v25  ;;  %v2325_v39 = vpack.c.bf16 %v752_v31, %v748_v30  ;;  %v2343_v25 = vpack.c.bf16 %v793_v20, %v789_v19  ;;  %v788_v26 = vld [vmem:[%s3387_s26 + $0xb00] sm:$0xff]  ;;  %v797_v31 = vld [vmem:[%s3387_s26 + $0xb48] sm:$0xff] }
 0x146   : > { %2560 = vmatprep.subr.bf16.mxu1 %v2559_v37  ;;  %v759_v37 = vld [vmem:[%s3387_s26 + $0xa18] sm:$0xff]  ;;  %v2581_v40 = vpack.c.bf16 %v754_v34, %v750_v32  ;;  %v794_v30 = vld [vmem:[%s3387_s26 + $0xb30] sm:$0xff]  ;;  %v801_v32 = vld [vmem:[%s3387_s26 + $0xb68] sm:$0xff] }
 0x147   : > { %v803_v34 = vld [vmem:[%s3387_s26 + $0xb78] sm:$0xff]  ;;  %v432_v19 = vld [vmem:[%s3379_s30 + $0x20] sm:$0xff] }
 0x148   : > { %2306 = vmatpush1.bf16.msra.mxu0 %v2305_v43  ;;  %v760_v43 = vld [vmem:[%s3387_s26 + $0xa20] sm:$0xff] }
 0x149   : > { %2562 = vmatpush1.bf16.msra.mxu1 %v2561_v44  ;;  %2308 = vmatprep.subr.bf16.mxu0 %v2307_v45  ;;  %v758_v44 = vld [vmem:[%s3387_s26 + $0xa10] sm:$0xff]  ;;  %v2583_v45 = vpack.c.bf16 %v763_v38, %v759_v37  ;;  %v2329_v51 = vpack.c.bf16 %v760_v43, %v756_v42  ;;  %v2347_v37 = vpack.c.bf16 %v801_v32, %v797_v31  ;;  %v796_v38 = vld [vmem:[%s3387_s26 + $0xb40] sm:$0xff]  ;;  %v805_v43 = vld [vmem:[%s3387_s26 + $0xb88] sm:$0xff] }
 0x14a   : > { %2564 = vmatprep.subr.bf16.mxu1 %v2563_v49  ;;  %v767_v49 = vld [vmem:[%s3387_s26 + $0xa58] sm:$0xff]  ;;  %v2585_v52 = vpack.c.bf16 %v762_v46, %v758_v44  ;;  %v802_v42 = vld [vmem:[%s3387_s26 + $0xb70] sm:$0xff]  ;;  %v809_v44 = vld [vmem:[%s3387_s26 + $0xba8] sm:$0xff] }
 0x14b   : > { %v811_v46 = vld [vmem:[%s3387_s26 + $0xbb8] sm:$0xff] }
 0x14c   : > { %2310 = vmatpush1.bf16.msra.mxu0 %v2309_v55  ;;  %v768_v55 = vld [vmem:[%s3387_s26 + $0xa60] sm:$0xff]  ;;  %v843_v31 = vld [vmem:[%s3387_s26 + $0xcb8] sm:$0xff] }
 0x14d   : > { %2566 = vmatpush1.bf16.msra.mxu1 %v2565_v56  ;;  %2312 = vmatprep.subr.bf16.mxu0 %v2311_v57  ;;  %v766_v56 = vld [vmem:[%s3387_s26 + $0xa50] sm:$0xff]  ;;  %v2587_v57 = vpack.c.bf16 %v771_v50, %v767_v49  ;;  %v2333_v63 = vpack.c.bf16 %v768_v55, %v764_v54  ;;  %v2351_v49 = vpack.c.bf16 %v809_v44, %v805_v43  ;;  %v804_v50 = vld [vmem:[%s3387_s26 + $0xb80] sm:$0xff]  ;;  %v813_v55 = vld [vmem:[%s3387_s26 + $0xbc8] sm:$0xff] }
 0x14e   : > { %2568 = vmatprep.subr.bf16.mxu1 %v2567_v61  ;;  %v775_v61 = vld [vmem:[%s3387_s26 + $0xa98] sm:$0xff]  ;;  %v2589_v0 = vpack.c.bf16 %v770_v58, %v766_v56  ;;  %v810_v54 = vld [vmem:[%s3387_s26 + $0xbb0] sm:$0xff]  ;;  %v817_v56 = vld [vmem:[%s3387_s26 + $0xbe8] sm:$0xff] }
 0x14f   : > { %v819_v58 = vld [vmem:[%s3387_s26 + $0xbf8] sm:$0xff] }
 0x150   : > { %2314 = vmatpush1.bf16.msra.mxu0 %v2313_v3  ;;  %v776_v3 = vld [vmem:[%s3387_s26 + $0xaa0] sm:$0xff]  ;;  %v435_v32 = vld [vmem:[%s3379_s30 + $0x38] sm:$0xff] }
 0x151   : > { %2570 = vmatpush1.bf16.msra.mxu1 %v2569_v4  ;;  %2316 = vmatprep.subr.bf16.mxu0 %v2315_v5  ;;  %v774_v4 = vld [vmem:[%s3387_s26 + $0xa90] sm:$0xff]  ;;  %v2591_v5 = vpack.c.bf16 %v779_v62, %v775_v61  ;;  %v2337_v11 = vpack.c.bf16 %v776_v3, %v772_v2  ;;  %v2355_v61 = vpack.c.bf16 %v817_v56, %v813_v55  ;;  %v812_v62 = vld [vmem:[%s3387_s26 + $0xbc0] sm:$0xff]  ;;  %v821_v3 = vld [vmem:[%s3387_s26 + $0xc08] sm:$0xff] }
 0x152   : > { %2572 = vmatprep.subr.bf16.mxu1 %v2571_v9  ;;  %v783_v9 = vld [vmem:[%s3387_s26 + $0xad8] sm:$0xff]  ;;  %v2593_v12 = vpack.c.bf16 %v778_v6, %v774_v4  ;;  %v818_v2 = vld [vmem:[%s3387_s26 + $0xbf0] sm:$0xff]  ;;  %v825_v4 = vld [vmem:[%s3387_s26 + $0xc28] sm:$0xff] }
 0x153   : > { %v827_v6 = vld [vmem:[%s3387_s26 + $0xc38] sm:$0xff] }
 0x154   : > { %2318 = vmatpush1.bf16.msra.mxu0 %v2317_v15  ;;  %v784_v15 = vld [vmem:[%s3387_s26 + $0xae0] sm:$0xff]  ;;  %v847_v43 = vld [vmem:[%s3387_s26 + $0xcd8] sm:$0xff] }
 0x155   : > { %2574 = vmatpush1.bf16.msra.mxu1 %v2573_v16  ;;  %2320 = vmatprep.subr.bf16.mxu0 %v2319_v17  ;;  %v782_v16 = vld [vmem:[%s3387_s26 + $0xad0] sm:$0xff]  ;;  %v2595_v17 = vpack.c.bf16 %v787_v10, %v783_v9  ;;  %v2341_v23 = vpack.c.bf16 %v784_v15, %v780_v14  ;;  %v2359_v9 = vpack.c.bf16 %v825_v4, %v821_v3  ;;  %v820_v10 = vld [vmem:[%s3387_s26 + $0xc00] sm:$0xff]  ;;  %v829_v15 = vld [vmem:[%s3387_s26 + $0xc48] sm:$0xff] }
 0x156   : > { %2576 = vmatprep.subr.bf16.mxu1 %v2575_v21  ;;  %v791_v21 = vld [vmem:[%s3387_s26 + $0xb18] sm:$0xff]  ;;  %v2597_v24 = vpack.c.bf16 %v786_v18, %v782_v16  ;;  %v826_v14 = vld [vmem:[%s3387_s26 + $0xc30] sm:$0xff]  ;;  %v833_v16 = vld [vmem:[%s3387_s26 + $0xc68] sm:$0xff] }
 0x157   : > { %v835_v18 = vld [vmem:[%s3387_s26 + $0xc78] sm:$0xff] }
 0x158   : > { %2322 = vmatpush1.bf16.msra.mxu0 %v2321_v27  ;;  %v792_v27 = vld [vmem:[%s3387_s26 + $0xb20] sm:$0xff]  ;;  %v851_v44 = vld [vmem:[%s3387_s26 + $0xcf8] sm:$0xff] }
 0x159   : > { %2578 = vmatpush1.bf16.msra.mxu1 %v2577_v28  ;;  %2324 = vmatprep.subr.bf16.mxu0 %v2323_v29  ;;  %v790_v28 = vld [vmem:[%s3387_s26 + $0xb10] sm:$0xff]  ;;  %v2599_v29 = vpack.c.bf16 %v795_v22, %v791_v21  ;;  %v2345_v35 = vpack.c.bf16 %v792_v27, %v788_v26  ;;  %v2363_v22 = vpack.c.bf16 %v833_v16, %v829_v15  ;;  %v855_v55 = vld [vmem:[%s3387_s26 + $0xd18] sm:$0xff] }
 0x15a   : > { %2580 = vmatprep.subr.bf16.mxu1 %v2579_v33  ;;  %v799_v33 = vld [vmem:[%s3387_s26 + $0xb58] sm:$0xff]  ;;  %v2601_v36 = vpack.c.bf16 %v794_v30, %v790_v28  ;;  %v834_v27 = vld [vmem:[%s3387_s26 + $0xc70] sm:$0xff]  ;;  %v837_v28 = vld [vmem:[%s3387_s26 + $0xc88] sm:$0xff] }
 0x15b   : > { %v839_v30 = vld [vmem:[%s3387_s26 + $0xc98] sm:$0xff] }
 0x15c   : > { %2326 = vmatpush1.bf16.msra.mxu0 %v2325_v39  ;;  %v800_v39 = vld [vmem:[%s3387_s26 + $0xb60] sm:$0xff]  ;;  %v859_v56 = vld [vmem:[%s3387_s26 + $0xd38] sm:$0xff] }
 0x15d   : > { %2582 = vmatpush1.bf16.msra.mxu1 %v2581_v40  ;;  %2328 = vmatprep.subr.bf16.mxu0 %v2327_v41  ;;  %v798_v40 = vld [vmem:[%s3387_s26 + $0xb50] sm:$0xff]  ;;  %v2603_v41 = vpack.c.bf16 %v803_v34, %v799_v33  ;;  %v2349_v47 = vpack.c.bf16 %v800_v39, %v796_v38  ;;  %v2623_v39 = vpack.c.bf16 %v843_v31, %v839_v30  ;;  %v863_v3 = vld [vmem:[%s3387_s26 + $0xd58] sm:$0xff] }
 0x15e   : > { %2584 = vmatprep.subr.bf16.mxu1 %v2583_v45  ;;  %v807_v45 = vld [vmem:[%s3387_s26 + $0xb98] sm:$0xff]  ;;  %v2605_v48 = vpack.c.bf16 %v802_v42, %v798_v40  ;;  %v838_v38 = vld [vmem:[%s3387_s26 + $0xc90] sm:$0xff]  ;;  %v849_v42 = vld [vmem:[%s3387_s26 + $0xce8] sm:$0xff] }
 0x15f   : > { %v842_v40 = vld [vmem:[%s3387_s26 + $0xcb0] sm:$0xff]  ;;  %v867_v4 = vld [vmem:[%s3387_s26 + $0xd78] sm:$0xff] }
 0x160   : > { %2330 = vmatpush1.bf16.msra.mxu0 %v2329_v51  ;;  %v808_v51 = vld [vmem:[%s3387_s26 + $0xba0] sm:$0xff]  ;;  %v871_v15 = vld [vmem:[%s3387_s26 + $0xd98] sm:$0xff] }
 0x161   : > { %2586 = vmatpush1.bf16.msra.mxu1 %v2585_v52  ;;  %2332 = vmatprep.subr.bf16.mxu0 %v2331_v53  ;;  %v806_v52 = vld [vmem:[%s3387_s26 + $0xb90] sm:$0xff]  ;;  %v2607_v53 = vpack.c.bf16 %v811_v46, %v807_v45  ;;  %v2353_v59 = vpack.c.bf16 %v808_v51, %v804_v50  ;;  %v2625_v46 = vpack.c.bf16 %v842_v40, %v838_v38  ;;  %v875_v16 = vld [vmem:[%s3387_s26 + $0xdb8] sm:$0xff]  ;;  %v889_v38 = vld [vmem:[%s3387_s26 + $0xe28] sm:$0xff] }
 0x162   : > { %2588 = vmatprep.subr.bf16.mxu1 %v2587_v57  ;;  %v815_v57 = vld [vmem:[%s3387_s26 + $0xbd8] sm:$0xff]  ;;  %v2609_v60 = vpack.c.bf16 %v810_v54, %v806_v52  ;;  %v846_v50 = vld [vmem:[%s3387_s26 + $0xcd0] sm:$0xff]  ;;  %v2627_v51 = vpack.c.bf16 %v851_v44, %v847_v43  ;;  %v857_v54 = vld [vmem:[%s3387_s26 + $0xd28] sm:$0xff] }
 0x163   : > { %v850_v52 = vld [vmem:[%s3387_s26 + $0xcf0] sm:$0xff]  ;;  %v891_v40 = vld [vmem:[%s3387_s26 + $0xe38] sm:$0xff]  ;;  %v884_v44 = vld [vmem:[%s3387_s26 + $0xe00] sm:$0xff] }
 0x164   : > { %2334 = vmatpush1.bf16.msra.mxu0 %v2333_v63  ;;  %v816_v63 = vld [vmem:[%s3387_s26 + $0xbe0] sm:$0xff] }
 0x165   : > { %2590 = vmatpush1.bf16.msra.mxu1 %v2589_v0  ;;  %2336 = vmatprep.subr.bf16.mxu0 %v2335_v1  ;;  %v814_v0 = vld [vmem:[%s3387_s26 + $0xbd0] sm:$0xff]  ;;  %v2611_v1 = vpack.c.bf16 %v819_v58, %v815_v57  ;;  %v2357_v7 = vpack.c.bf16 %v816_v63, %v812_v62  ;;  %v2629_v58 = vpack.c.bf16 %v850_v52, %v846_v50  ;;  %v897_v50 = vld [vmem:[%s3387_s26 + $0xe68] sm:$0xff]  ;;  %v899_v52 = vld [vmem:[%s3387_s26 + $0xe78] sm:$0xff] }
 0x166   : > { %2592 = vmatprep.subr.bf16.mxu1 %v2591_v5  ;;  %v823_v5 = vld [vmem:[%s3387_s26 + $0xc18] sm:$0xff]  ;;  %v2613_v8 = vpack.c.bf16 %v818_v2, %v814_v0  ;;  %v854_v62 = vld [vmem:[%s3387_s26 + $0xd10] sm:$0xff]  ;;  %v2631_v63 = vpack.c.bf16 %v859_v56, %v855_v55  ;;  %v865_v2 = vld [vmem:[%s3387_s26 + $0xd68] sm:$0xff] }
 0x167   : > { %v858_v0 = vld [vmem:[%s3387_s26 + $0xd30] sm:$0xff]  ;;  %v892_v56 = vld [vmem:[%s3387_s26 + $0xe40] sm:$0xff] }
 0x168   : > { %2338 = vmatpush1.bf16.msra.mxu0 %v2337_v11  ;;  %v824_v11 = vld [vmem:[%s3387_s26 + $0xc20] sm:$0xff] }
 0x169   : > { %2594 = vmatpush1.bf16.msra.mxu1 %v2593_v12  ;;  %2340 = vmatprep.subr.bf16.mxu0 %v2339_v13  ;;  %v822_v12 = vld [vmem:[%s3387_s26 + $0xc10] sm:$0xff]  ;;  %v2615_v13 = vpack.c.bf16 %v827_v6, %v823_v5  ;;  %v2361_v20 = vpack.c.bf16 %v824_v11, %v820_v10  ;;  %v2633_v6 = vpack.c.bf16 %v858_v0, %v854_v62  ;;  %v905_v62 = vld [vmem:[%s3387_s26 + $0xea8] sm:$0xff]  ;;  %v907_v0 = vld [vmem:[%s3387_s26 + $0xeb8] sm:$0xff] }
 0x16a   : > { %2596 = vmatprep.subr.bf16.mxu1 %v2595_v17  ;;  %v831_v17 = vld [vmem:[%s3387_s26 + $0xc58] sm:$0xff]  ;;  %v2617_v21 = vpack.c.bf16 %v826_v14, %v822_v12  ;;  %v862_v10 = vld [vmem:[%s3387_s26 + $0xd50] sm:$0xff]  ;;  %v2635_v11 = vpack.c.bf16 %v867_v4, %v863_v3  ;;  %v873_v14 = vld [vmem:[%s3387_s26 + $0xda8] sm:$0xff] }
 0x16b   : > { %v2619_v26 = vpack.c.bf16 %v835_v18, %v831_v17  ;;  %v866_v12 = vld [vmem:[%s3387_s26 + $0xd70] sm:$0xff]  ;;  %v900_v4 = vld [vmem:[%s3387_s26 + $0xe80] sm:$0xff] }
 0x16c   : > { %2342 = vmatpush1.bf16.msra.mxu0 %v2341_v23  ;;  %v828_v23 = vld [vmem:[%s3387_s26 + $0xc40] sm:$0xff]  ;;  %v2637_v18 = vpack.c.bf16 %v866_v12, %v862_v10  ;;  %v913_v10 = vld [vmem:[%s3387_s26 + $0xee8] sm:$0xff]  ;;  %v915_v12 = vld [vmem:[%s3387_s26 + $0xef8] sm:$0xff] }
 0x16d   : > { %2598 = vmatpush1.bf16.msra.mxu1 %v2597_v24  ;;  %2344 = vmatprep.subr.bf16.mxu0 %v2343_v25  ;;  %v832_v24 = vld [vmem:[%s3387_s26 + $0xc60] sm:$0xff]  ;;  %v830_v25 = vld [vmem:[%s3387_s26 + $0xc50] sm:$0xff] }
 0x16e   : > { %2600 = vmatprep.subr.bf16.mxu1 %v2599_v29  ;;  %v841_v29 = vld [vmem:[%s3387_s26 + $0xca8] sm:$0xff]  ;;  %v2365_v33 = vpack.c.bf16 %v832_v24, %v828_v23  ;;  %v2621_v34 = vpack.c.bf16 %v834_v27, %v830_v25  ;;  %v2639_v23 = vpack.c.bf16 %v875_v16, %v871_v15  ;;  %v874_v24 = vld [vmem:[%s3387_s26 + $0xdb0] sm:$0xff]  ;;  %v879_v27 = vld [vmem:[%s3387_s26 + $0xdd8] sm:$0xff] }
 0x16f   : > { %v877_v25 = vld [vmem:[%s3387_s26 + $0xdc8] sm:$0xff]  ;;  %v908_v16 = vld [vmem:[%s3387_s26 + $0xec0] sm:$0xff] }
 0x170   : > { %2346 = vmatpush1.bf16.msra.mxu0 %v2345_v35  ;;  %v2367_v35 = vpack.c.bf16 %v841_v29, %v837_v28  ;;  %v883_v28 = vld [vmem:[%s3387_s26 + $0xdf8] sm:$0xff] }
 0x171   : > { %2602 = vmatpush1.bf16.msra.mxu1 %v2601_v36  ;;  %2348 = vmatprep.subr.bf16.mxu0 %v2347_v37  ;;  %v836_v36 = vld [vmem:[%s3387_s26 + $0xc80] sm:$0xff] }
 0x172   : > { %2604 = vmatprep.subr.bf16.mxu1 %v2603_v41  ;;  %v840_v37 = vld [vmem:[%s3387_s26 + $0xca0] sm:$0xff]  ;;  %v845_v41 = vld [vmem:[%s3387_s26 + $0xcc8] sm:$0xff] }
 0x173   : > { %v2369_v45 = vpack.c.bf16 %v840_v37, %v836_v36  ;;  %v882_v36 = vld [vmem:[%s3387_s26 + $0xdf0] sm:$0xff]  ;;  %v885_v37 = vld [vmem:[%s3387_s26 + $0xe08] sm:$0xff] }
 0x174   : > { %2350 = vmatpush1.bf16.msra.mxu0 %v2349_v47  ;;  %v2371_v47 = vpack.c.bf16 %v849_v42, %v845_v41  ;;  %v2391_v43 = vpack.c.bf16 %v889_v38, %v885_v37 }
 0x175   : > { %2606 = vmatpush1.bf16.msra.mxu1 %v2605_v48  ;;  %2352 = vmatprep.subr.bf16.mxu0 %v2351_v49  ;;  %v844_v48 = vld [vmem:[%s3387_s26 + $0xcc0] sm:$0xff] }
 0x176   : > { %2608 = vmatprep.subr.bf16.mxu1 %v2607_v53  ;;  %v848_v49 = vld [vmem:[%s3387_s26 + $0xce0] sm:$0xff]  ;;  %v853_v53 = vld [vmem:[%s3387_s26 + $0xd08] sm:$0xff] }
 0x177   : > { %v2373_v57 = vpack.c.bf16 %v848_v49, %v844_v48  ;;  %v890_v48 = vld [vmem:[%s3387_s26 + $0xe30] sm:$0xff]  ;;  %v893_v49 = vld [vmem:[%s3387_s26 + $0xe48] sm:$0xff] }
 0x178   : > { %2354 = vmatpush1.bf16.msra.mxu0 %v2353_v59  ;;  %v2375_v59 = vpack.c.bf16 %v857_v54, %v853_v53  ;;  %v2395_v55 = vpack.c.bf16 %v897_v50, %v893_v49 }
 0x179   : > { %2610 = vmatpush1.bf16.msra.mxu1 %v2609_v60  ;;  %2356 = vmatprep.subr.bf16.mxu0 %v2355_v61  ;;  %v852_v60 = vld [vmem:[%s3387_s26 + $0xd00] sm:$0xff] }
 0x17a   : > { %2612 = vmatprep.subr.bf16.mxu1 %v2611_v1  ;;  %v856_v61 = vld [vmem:[%s3387_s26 + $0xd20] sm:$0xff]  ;;  %v861_v1 = vld [vmem:[%s3387_s26 + $0xd48] sm:$0xff] }
 0x17b   : > { %v2377_v5 = vpack.c.bf16 %v856_v61, %v852_v60  ;;  %v898_v60 = vld [vmem:[%s3387_s26 + $0xe70] sm:$0xff]  ;;  %v901_v61 = vld [vmem:[%s3387_s26 + $0xe88] sm:$0xff] }
 0x17c   : > { %2358 = vmatpush1.bf16.msra.mxu0 %v2357_v7  ;;  %v2379_v7 = vpack.c.bf16 %v865_v2, %v861_v1  ;;  %v2399_v3 = vpack.c.bf16 %v905_v62, %v901_v61 }
 0x17d   : > { %2614 = vmatpush1.bf16.msra.mxu1 %v2613_v8  ;;  %2360 = vmatprep.subr.bf16.mxu0 %v2359_v9  ;;  %v860_v8 = vld [vmem:[%s3387_s26 + $0xd40] sm:$0xff] }
 0x17e   : > { %2616 = vmatprep.subr.bf16.mxu1 %v2615_v13  ;;  %v864_v9 = vld [vmem:[%s3387_s26 + $0xd60] sm:$0xff]  ;;  %v869_v13 = vld [vmem:[%s3387_s26 + $0xd88] sm:$0xff] }
 0x17f   : > { %1177 = vmatmul.mubr.f32.vlgmr.msra.gmra.mrb[0].mxu0 %v432_v19  ;;  %v2381_v17 = vpack.c.bf16 %v864_v9, %v860_v8  ;;  %v906_v8 = vld [vmem:[%s3387_s26 + $0xeb0] sm:$0xff]  ;;  %v909_v9 = vld [vmem:[%s3387_s26 + $0xec8] sm:$0xff] }
 0x180   : > { %2362 = vmatpush1.bf16.msra.mxu0 %v2361_v20  ;;  %1461 = vmatmul.mubr.f32.vlgmr.msra.gmra.mrb[0].mxu1 %v432_v19  ;;  %v2383_v19 = vpack.c.bf16 %v873_v14, %v869_v13  ;;  %v868_v20 = vld [vmem:[%s3387_s26 + $0xd80] sm:$0xff]  ;;  %v2403_v15 = vpack.c.bf16 %v913_v10, %v909_v9  ;;  %v1647_v9 = vld [vmem:[%s3397_s17 + $0x88] sm:$0xff]  ;;  %v1678_v10 = vld [vmem:[%s3397_s17 + $0x180] sm:$0xff] }
 0x181   : > { %2618 = vmatpush1.bf16.msra.mxu1 %v2617_v21  ;;  %2364 = vmatprep.subr.bf16.mxu0 %v2363_v22  ;;  %v872_v21 = vld [vmem:[%s3387_s26 + $0xda0] sm:$0xff]  ;;  %v870_v22 = vld [vmem:[%s3387_s26 + $0xd90] sm:$0xff] }
 0x182   : > { %2620 = vmatprep.subr.bf16.mxu1 %v2619_v26  ;;  %1247 = vmatprep.mubr.f32.mxu0 %v435_v32  ;;  %v881_v26 = vld [vmem:[%s3387_s26 + $0xde8] sm:$0xff]  ;;  %v2385_v29 = vpack.c.bf16 %v872_v21, %v868_v20  ;;  %v2641_v30 = vpack.c.bf16 %v874_v24, %v870_v22  ;;  %v914_v20 = vld [vmem:[%s3387_s26 + $0xef0] sm:$0xff]  ;;  %v923_v24 = vld [vmem:[%s3387_s26 + $0xf38] sm:$0xff] }
 0x183   : > { %1531 = vmatprep.mubr.f32.mxu1 %v435_v32  ;;  %v2387_v31 = vpack.c.bf16 %v881_v26, %v877_v25  ;;  %v876_v32 = vld [vmem:[%s3387_s26 + $0xdc0] sm:$0xff]  ;;  %v917_v21 = vld [vmem:[%s3387_s26 + $0xf08] sm:$0xff] }
 0x184   : > { %2366 = vmatpush1.bf16.msra.mxu0 %v2365_v33  ;;  %v880_v33 = vld [vmem:[%s3387_s26 + $0xde0] sm:$0xff]  ;;  %v921_v22 = vld [vmem:[%s3387_s26 + $0xf28] sm:$0xff] }
 0x185   : > { %2622 = vmatpush1.bf16.msra.mxu1 %v2621_v34  ;;  %2368 = vmatprep.subr.bf16.mxu0 %v2367_v35  ;;  %v878_v34 = vld [vmem:[%s3387_s26 + $0xdd0] sm:$0xff]  ;;  %v2643_v35 = vpack.c.bf16 %v883_v28, %v879_v27  ;;  %v2389_v41 = vpack.c.bf16 %v880_v33, %v876_v32  ;;  %v2407_v27 = vpack.c.bf16 %v921_v22, %v917_v21  ;;  %v916_v28 = vld [vmem:[%s3387_s26 + $0xf00] sm:$0xff]  ;;  %v925_v33 = vld [vmem:[%s3387_s26 + $0xf48] sm:$0xff] }
 0x186   : > { %2624 = vmatprep.subr.bf16.mxu1 %v2623_v39  ;;  %v887_v39 = vld [vmem:[%s3387_s26 + $0xe18] sm:$0xff]  ;;  %v2645_v42 = vpack.c.bf16 %v882_v36, %v878_v34  ;;  %v922_v32 = vld [vmem:[%s3387_s26 + $0xf30] sm:$0xff]  ;;  %v929_v34 = vld [vmem:[%s3387_s26 + $0xf68] sm:$0xff] }
 0x187   : > { %v931_v36 = vld [vmem:[%s3387_s26 + $0xf78] sm:$0xff]  ;;  %v1649_v21 = vld [vmem:[%s3397_s17 + $0x98] sm:$0xff] }
 0x188   : > { %2370 = vmatpush1.bf16.msra.mxu0 %v2369_v45  ;;  %v888_v45 = vld [vmem:[%s3387_s26 + $0xe20] sm:$0xff]  ;;  %v1680_v22 = vld [vmem:[%s3397_s17 + $0x190] sm:$0xff] }
 0x189   : > { %2626 = vmatpush1.bf16.msra.mxu1 %v2625_v46  ;;  %2372 = vmatprep.subr.bf16.mxu0 %v2371_v47  ;;  %v886_v46 = vld [vmem:[%s3387_s26 + $0xe10] sm:$0xff]  ;;  %v2647_v47 = vpack.c.bf16 %v891_v40, %v887_v39  ;;  %v2393_v53 = vpack.c.bf16 %v888_v45, %v884_v44  ;;  %v2411_v39 = vpack.c.bf16 %v929_v34, %v925_v33  ;;  %v924_v40 = vld [vmem:[%s3387_s26 + $0xf40] sm:$0xff]  ;;  %v933_v45 = vld [vmem:[%s3387_s26 + $0xf88] sm:$0xff] }
 0x18a   : > { %2628 = vmatprep.subr.bf16.mxu1 %v2627_v51  ;;  %v895_v51 = vld [vmem:[%s3387_s26 + $0xe58] sm:$0xff]  ;;  %v2649_v54 = vpack.c.bf16 %v890_v48, %v886_v46  ;;  %v930_v44 = vld [vmem:[%s3387_s26 + $0xf70] sm:$0xff]  ;;  %v937_v46 = vld [vmem:[%s3387_s26 + $0xfa8] sm:$0xff] }
 0x18b   : > { %v939_v48 = vld [vmem:[%s3387_s26 + $0xfb8] sm:$0xff] }
 0x18c   : > { %2374 = vmatpush1.bf16.msra.mxu0 %v2373_v57  ;;  %v896_v57 = vld [vmem:[%s3387_s26 + $0xe60] sm:$0xff] }
 0x18d   : > { %2630 = vmatpush1.bf16.msra.mxu1 %v2629_v58  ;;  %2376 = vmatprep.subr.bf16.mxu0 %v2375_v59  ;;  %v894_v58 = vld [vmem:[%s3387_s26 + $0xe50] sm:$0xff]  ;;  %v2651_v59 = vpack.c.bf16 %v899_v52, %v895_v51  ;;  %v2397_v1 = vpack.c.bf16 %v896_v57, %v892_v56  ;;  %v2415_v51 = vpack.c.bf16 %v937_v46, %v933_v45  ;;  %v932_v52 = vld [vmem:[%s3387_s26 + $0xf80] sm:$0xff]  ;;  %v941_v57 = vld [vmem:[%s3387_s26 + $0xfc8] sm:$0xff] }
 0x18e   : > { %2632 = vmatprep.subr.bf16.mxu1 %v2631_v63  ;;  %v903_v63 = vld [vmem:[%s3387_s26 + $0xe98] sm:$0xff]  ;;  %v2653_v2 = vpack.c.bf16 %v898_v60, %v894_v58  ;;  %v938_v56 = vld [vmem:[%s3387_s26 + $0xfb0] sm:$0xff]  ;;  %v945_v58 = vld [vmem:[%s3387_s26 + $0xfe8] sm:$0xff] }
 0x18f   : > { %v947_v60 = vld [vmem:[%s3387_s26 + $0xff8] sm:$0xff] }
 0x190   : > { %2378 = vmatpush1.bf16.msra.mxu0 %v2377_v5  ;;  %v904_v5 = vld [vmem:[%s3387_s26 + $0xea0] sm:$0xff]  ;;  %v1684_v45 = vld [vmem:[%s3397_s17 + $0x1b0] sm:$0xff] }
 0x191   : > { %2634 = vmatpush1.bf16.msra.mxu1 %v2633_v6  ;;  %2380 = vmatprep.subr.bf16.mxu0 %v2379_v7  ;;  %v902_v6 = vld [vmem:[%s3387_s26 + $0xe90] sm:$0xff]  ;;  %v2655_v7 = vpack.c.bf16 %v907_v0, %v903_v63  ;;  %v2401_v13 = vpack.c.bf16 %v904_v5, %v900_v4  ;;  %v2419_v63 = vpack.c.bf16 %v945_v58, %v941_v57  ;;  %v940_v0 = vld [vmem:[%s3387_s26 + $0xfc0] sm:$0xff] }
 0x192   : > { %2636 = vmatprep.subr.bf16.mxu1 %v2635_v11  ;;  %v911_v11 = vld [vmem:[%s3387_s26 + $0xed8] sm:$0xff]  ;;  %v2657_v14 = vpack.c.bf16 %v906_v8, %v902_v6  ;;  %v946_v4 = vld [vmem:[%s3387_s26 + $0xff0] sm:$0xff]  ;;  %v1646_v8 = vld [vmem:[%s3397_s17 + $0x80] sm:$0xff] }
 0x193   : > { %v1687_v57 = vld [vmem:[%s3397_s17 + $0x1c8] sm:$0xff] }
 0x194   : > { %2382 = vmatpush1.bf16.msra.mxu0 %v2381_v17  ;;  %v912_v17 = vld [vmem:[%s3387_s26 + $0xee0] sm:$0xff] }
 0x195   : > { %2638 = vmatpush1.bf16.msra.mxu1 %v2637_v18  ;;  %2384 = vmatprep.subr.bf16.mxu0 %v2383_v19  ;;  %v910_v18 = vld [vmem:[%s3387_s26 + $0xed0] sm:$0xff]  ;;  %v2659_v19 = vpack.c.bf16 %v915_v12, %v911_v11  ;;  %v2405_v25 = vpack.c.bf16 %v912_v17, %v908_v16  ;;  %v2679_v11 = vpack.c.bf16 %v1647_v9, %v1646_v8  ;;  %v1662_v17 = vld [vmem:[%s3397_s17 + $0x100] sm:$0xff]  ;;  %v1640_v9 = vld [vmem:[%s3397_s17 + $0x50] sm:$0xff] }
 0x196   : > { %2640 = vmatprep.subr.bf16.mxu1 %v2639_v23  ;;  %v919_v23 = vld [vmem:[%s3387_s26 + $0xf18] sm:$0xff]  ;;  %v2661_v26 = vpack.c.bf16 %v914_v20, %v910_v18  ;;  %v1679_v12 = vld [vmem:[%s3397_s17 + $0x188] sm:$0xff] }
 0x197   : > { %v1663_v18 = vld [vmem:[%s3397_s17 + $0x108] sm:$0xff] }
 0x198   : > { %2386 = vmatpush1.bf16.msra.mxu0 %v2385_v29  ;;  %v920_v29 = vld [vmem:[%s3387_s26 + $0xf20] sm:$0xff]  ;;  %v2713_v20 = vpack.c.bf16 %v1663_v18, %v1662_v17  ;;  %v1691_v17 = vld [vmem:[%s3397_s17 + $0x1e8] sm:$0xff] }
 0x199   : > { %2642 = vmatpush1.bf16.msra.mxu1 %v2641_v30  ;;  %2388 = vmatprep.subr.bf16.mxu0 %v2387_v31  ;;  %v918_v30 = vld [vmem:[%s3387_s26 + $0xf10] sm:$0xff]  ;;  %v2663_v31 = vpack.c.bf16 %v923_v24, %v919_v23  ;;  %v2409_v37 = vpack.c.bf16 %v920_v29, %v916_v28  ;;  %v1681_v23 = vld [vmem:[%s3397_s17 + $0x198] sm:$0xff]  ;;  %v1664_v28 = vld [vmem:[%s3397_s17 + $0x110] sm:$0xff] }
 0x19a   : > { %2644 = vmatprep.subr.bf16.mxu1 %v2643_v35  ;;  %v927_v35 = vld [vmem:[%s3387_s26 + $0xf58] sm:$0xff]  ;;  %v2665_v38 = vpack.c.bf16 %v922_v32, %v918_v30  ;;  %v1665_v30 = vld [vmem:[%s3397_s17 + $0x118] sm:$0xff]  ;;  %v1651_v32 = vld [vmem:[%s3397_s17 + $0xa8] sm:$0xff] }
 0x19b   : > { %v2717_v33 = vpack.c.bf16 %v1665_v30, %v1664_v28  ;;  %v1692_v28 = vld [vmem:[%s3397_s17 + $0x1f0] sm:$0xff] }
 0x19c   : > { %2390 = vmatpush1.bf16.msra.mxu0 %v2389_v41  ;;  %v928_v41 = vld [vmem:[%s3387_s26 + $0xf60] sm:$0xff] }
 0x19d   : > { %2646 = vmatpush1.bf16.msra.mxu1 %v2645_v42  ;;  %2392 = vmatprep.subr.bf16.mxu0 %v2391_v43  ;;  %v926_v42 = vld [vmem:[%s3387_s26 + $0xf50] sm:$0xff]  ;;  %v2667_v43 = vpack.c.bf16 %v931_v36, %v927_v35  ;;  %v2413_v49 = vpack.c.bf16 %v928_v41, %v924_v40  ;;  %v1682_v35 = vld [vmem:[%s3397_s17 + $0x1a0] sm:$0xff] }
 0x19e   : > { %2648 = vmatprep.subr.bf16.mxu1 %v2647_v47  ;;  %v935_v47 = vld [vmem:[%s3387_s26 + $0xf98] sm:$0xff]  ;;  %v2669_v50 = vpack.c.bf16 %v930_v44, %v926_v42  ;;  %v1683_v36 = vld [vmem:[%s3397_s17 + $0x1a8] sm:$0xff]  ;;  %v1666_v40 = vld [vmem:[%s3397_s17 + $0x120] sm:$0xff] }
 0x19f   : > { %v1667_v41 = vld [vmem:[%s3397_s17 + $0x128] sm:$0xff]  ;;  %v1653_v44 = vld [vmem:[%s3397_s17 + $0xb8] sm:$0xff] }
 0x1a0   : > { %2394 = vmatpush1.bf16.msra.mxu0 %v2393_v53  ;;  %v936_v53 = vld [vmem:[%s3387_s26 + $0xfa0] sm:$0xff]  ;;  %v2721_v46 = vpack.c.bf16 %v1667_v41, %v1666_v40  ;;  %v950_v40 = vlaneseq }
 0x1a1   : > { %2650 = vmatpush1.bf16.msra.mxu1 %v2649_v54  ;;  %2396 = vmatprep.subr.bf16.mxu0 %v2395_v55  ;;  %v934_v54 = vld [vmem:[%s3387_s26 + $0xf90] sm:$0xff]  ;;  %v2671_v55 = vpack.c.bf16 %v939_v48, %v935_v47  ;;  %v2417_v61 = vpack.c.bf16 %v936_v53, %v932_v52  ;;  %v1685_v48 = vld [vmem:[%s3397_s17 + $0x1b8] sm:$0xff]  ;;  %v1668_v52 = vld [vmem:[%s3397_s17 + $0x130] sm:$0xff] }
 0x1a2   : > { %2652 = vmatprep.subr.bf16.mxu1 %v2651_v59  ;;  %v943_v59 = vld [vmem:[%s3387_s26 + $0xfd8] sm:$0xff]  ;;  %v2673_v62 = vpack.c.bf16 %v938_v56, %v934_v54  ;;  %v1669_v53 = vld [vmem:[%s3397_s17 + $0x138] sm:$0xff]  ;;  %v1654_v54 = vld [vmem:[%s3397_s17 + $0xc0] sm:$0xff]  ;;  %v951_v41 = vshrl.u32 %v950_v40, 7 }
 0x1a3   : > { %v1686_v56 = vld [vmem:[%s3397_s17 + $0x1c0] sm:$0xff] }
 0x1a4   : > { %2398 = vmatpush1.bf16.msra.mxu0 %v2397_v1  ;;  %v944_v1 = vld [vmem:[%s3387_s26 + $0xfe0] sm:$0xff] }
 0x1a5   : > { %2654 = vmatpush1.bf16.msra.mxu1 %v2653_v2  ;;  %2400 = vmatprep.subr.bf16.mxu0 %v2399_v3  ;;  %v2675_v2 = vpack.c.bf16 %v947_v60, %v943_v59  ;;  %v942_v3 = vld [vmem:[%s3387_s26 + $0xfd0] sm:$0xff]  ;;  %v2421_v5 = vpack.c.bf16 %v944_v1, %v940_v0  ;;  %v2725_v59 = vpack.c.bf16 %v1669_v53, %v1668_v52 }
 0x1a6   : > { %2656 = vmatprep.subr.bf16.mxu1 %v2655_v7  ;;  %v2677_v6 = vpack.c.bf16 %v946_v4, %v942_v3  ;;  %v434_v7 = vld [vmem:[%s3379_s30 + $0x30] sm:$0xff]  ;;  %v2727_v0 = vpack.c.bf16 %v1687_v57, %v1686_v56  ;;  %v1657_v3 = vld [vmem:[%s3397_s17 + $0xd8] sm:$0xff]  ;;  %v1688_v4 = vld [vmem:[%s3397_s17 + $0x1d0] sm:$0xff]  ;;  %s3008_s30 = scalar_lea.vmem %s3007_s0, 1024 }
 0x1a7   : > { %v1671_v1 = vld [vmem:[%s3397_s17 + $0x148] sm:$0xff]  ;;  %p3010_p1 = scmp.lt.s32.totalorder %s3008_s30, %s3002_s23 }
 0x1a8   : > { %2402 = vmatpush1.bf16.msra.mxu0 %v2401_v13  ;;  %v1630_v13 = vld [vmem:[%s3397_s17] sm:$0xff] }
 0x1a9   : > { %2658 = vmatpush1.bf16.msra.mxu1 %v2657_v14  ;;  %2404 = vmatprep.subr.bf16.mxu0 %v2403_v15  ;;  %v1631_v14 = vld [vmem:[%s3397_s17 + $0x8] sm:$0xff]  ;;  %v2711_v15 = vpack.c.bf16 %v1679_v12, %v1678_v10  ;;  %v1641_v10 = vld [vmem:[%s3397_s17 + $0x58] sm:$0xff]  ;;  %p3011_p13 = por %p3010_p1, %p3009_p3 }
 0x1aa   : > { %2660 = vmatprep.subr.bf16.mxu1 %v2659_v19  ;;  %v2681_v16 = vpack.c.bf16 %v1631_v14, %v1630_v13  ;;  %v1648_v19 = vld [vmem:[%s3397_s17 + $0x90] sm:$0xff]  ;;  %v1673_v13 = vld [vmem:[%s3397_s17 + $0x158] sm:$0xff]  ;;  %v1658_v14 = vld [vmem:[%s3397_s17 + $0xe0] sm:$0xff]  ;;  %v2701_v18 = vpack.c.bf16 %v1641_v10, %v1640_v9 }
 0x1ab   : > { %v2683_v24 = vpack.c.bf16 %v1649_v21, %v1648_v19  ;;  %v1642_v21 = vld [vmem:[%s3397_s17 + $0x60] sm:$0xff]  ;;  %p3012_p6 = pnand %p3011_p13, %p3005_p4 }
 0x1ac   : > { %2406 = vmatpush1.bf16.msra.mxu0 %v2405_v25  ;;  %v2715_v25 = vpack.c.bf16 %v1681_v23, %v1680_v22  ;;  %v1643_v22 = vld [vmem:[%s3397_s17 + $0x68] sm:$0xff]  ;;  %v1674_v23 = vld [vmem:[%s3397_s17 + $0x160] sm:$0xff] }
 0x1ad   : > { %2662 = vmatpush1.bf16.msra.mxu1 %v2661_v26  ;;  %2408 = vmatprep.subr.bf16.mxu0 %v2407_v27  ;;  %v1632_v26 = vld [vmem:[%s3397_s17 + $0x10] sm:$0xff]  ;;  %v1633_v27 = vld [vmem:[%s3397_s17 + $0x18] sm:$0xff]  ;;  %v2705_v30 = vpack.c.bf16 %v1643_v22, %v1642_v21 }
 0x1ae   : > { %2664 = vmatprep.subr.bf16.mxu1 %v2663_v31  ;;  %v2685_v29 = vpack.c.bf16 %v1633_v27, %v1632_v26  ;;  %v1650_v31 = vld [vmem:[%s3397_s17 + $0xa0] sm:$0xff]  ;;  %v1660_v26 = vld [vmem:[%s3397_s17 + $0xf0] sm:$0xff]  ;;  %v1661_v27 = vld [vmem:[%s3397_s17 + $0xf8] sm:$0xff] }
 0x1af   : > { %v2687_v34 = vpack.c.bf16 %v1651_v32, %v1650_v31  ;;  %v2707_v32 = vpack.c.bf16 %v1661_v27, %v1660_v26 }
 0x1b0   : > { %2410 = vmatpush1.bf16.msra.mxu0 %v2409_v37  ;;  %v1634_v37 = vld [vmem:[%s3397_s17 + $0x20] sm:$0xff] }
 0x1b1   : > { %2666 = vmatpush1.bf16.msra.mxu1 %v2665_v38  ;;  %2412 = vmatprep.subr.bf16.mxu0 %v2411_v39  ;;  %v2719_v38 = vpack.c.bf16 %v1683_v36, %v1682_v35  ;;  %v1635_v39 = vld [vmem:[%s3397_s17 + $0x28] sm:$0xff]  ;;  %v1676_v36 = vld [vmem:[%s3397_s17 + $0x170] sm:$0xff] }
 0x1b2   : > { %2668 = vmatprep.subr.bf16.mxu1 %v2667_v43  ;;  %v2689_v42 = vpack.c.bf16 %v1635_v39, %v1634_v37  ;;  %v1652_v43 = vld [vmem:[%s3397_s17 + $0xb0] sm:$0xff]  ;;  %v1677_v37 = vld [vmem:[%s3397_s17 + $0x178] sm:$0xff] }
 0x1b3   : > { %v2691_v47 = vpack.c.bf16 %v1653_v44, %v1652_v43  ;;  %v2741_v39 = vpack.c.bf16 %v1677_v37, %v1676_v36  ;;  %v948_v43 = vld [vmem:[%s3395_s15] sm:$0xf]  ;;  %v960_v44 = vsub.s32 2, %v951_v41 }
 0x1b4   : > { %2414 = vmatpush1.bf16.msra.mxu0 %v2413_v49  ;;  %v1636_v49 = vld [vmem:[%s3397_s17 + $0x30] sm:$0xff] }
 0x1b5   : > { %2670 = vmatpush1.bf16.msra.mxu1 %v2669_v50  ;;  %2416 = vmatprep.subr.bf16.mxu0 %v2415_v51  ;;  %v1637_v50 = vld [vmem:[%s3397_s17 + $0x38] sm:$0xff]  ;;  %v2723_v51 = vpack.c.bf16 %v1685_v48, %v1684_v45  ;;  %v956_v45 = vsub.s32 1, %v951_v41  ;;  %v961_v48 = vrot.slane %v948_v43, %v960_v44 }
 0x1b6   : > { %2672 = vmatprep.subr.bf16.mxu1 %v2671_v55  ;;  %v1655_v55 = vld [vmem:[%s3397_s17 + $0xc8] sm:$0xff]  ;;  %v2693_v58 = vpack.c.bf16 %v1637_v50, %v1636_v49 }
 0x1b7   : > { %v2695_v60 = vpack.c.bf16 %v1655_v55, %v1654_v54  ;;  %v957_v49 = vrot.slane %v948_v43, %v956_v45 }
 0x1b8   : > { %2418 = vmatpush1.bf16.msra.mxu0 %v2417_v61  ;;  %v1638_v61 = vld [vmem:[%s3397_s17 + $0x40] sm:$0xff] }
 0x1b9   : > { %2674 = vmatpush1.bf16.msra.mxu1 %v2673_v62  ;;  %2420 = vmatprep.subr.bf16.mxu0 %v2419_v63  ;;  %v1639_v62 = vld [vmem:[%s3397_s17 + $0x48] sm:$0xff]  ;;  %v1670_v63 = vld [vmem:[%s3397_s17 + $0x140] sm:$0xff] }
 0x1ba   : > { %2676 = vmatprep.subr.bf16.mxu1 %v2675_v2  ;;  %v1656_v2 = vld [vmem:[%s3397_s17 + $0xd0] sm:$0xff] }
 0x1bb   : > { %v2699_v8 = vpack.c.bf16 %v1657_v3, %v1656_v2 }
 0x1bc   : > { %2422 = vmatpush1.bf16.msra.mxu0 %v2421_v5  ;;  %v1689_v5 = vld [vmem:[%s3397_s17 + $0x1d8] sm:$0xff] }
 0x1bd   : > { %2678 = vmatpush1.bf16.msra.mxu1 %v2677_v6  ;;  %2680 = vmatprep.subr.bf16.mxu0 %v2679_v11  ;;  %v2697_v6 = vpack.c.bf16 %v1639_v62, %v1638_v61  ;;  %v1672_v11 = vld [vmem:[%s3397_s17 + $0x150] sm:$0xff]  ;;  %v2731_v12 = vpack.c.bf16 %v1689_v5, %v1688_v4 }
 0x1be   : > { %2712 = vmatprep.subr.bf16.mxu1 %v2711_v15  ;;  %v1659_v15 = vld [vmem:[%s3397_s17 + $0xe8] sm:$0xff]  ;;  %v2733_v19 = vpack.c.bf16 %v1673_v13, %v1672_v11 }
 0x1bf   : > { %1248 = vmatmul.mubr.f32.vlgmr.msra.gmra.mrb[0].mxu0 %v434_v7 }
 0x1c0   : > { %1532 = vmatmul.mubr.f32.vlgmr.msra.gmra.mrb[0].mxu1 %v434_v7  ;;  %2682 = vmatpush3.bf16.msra.mxu0 %v2681_v16  ;;  %v2729_v7 = vpack.c.bf16 %v1671_v1, %v1670_v63  ;;  %v1690_v16 = vld [vmem:[%s3397_s17 + $0x1e0] sm:$0xff] }
 0x1c1   : > { %2714 = vmatpush3.bf16.msra.mxu1 %v2713_v20  ;;  %2684 = vmatprep.subr.bf16.mxu0 %v2683_v24  ;;  %v2703_v20 = vpack.c.bf16 %v1659_v15, %v1658_v14  ;;  %v2735_v24 = vpack.c.bf16 %v1691_v17, %v1690_v16 }
 0x1c2   : > { %2716 = vmatprep.subr.bf16.mxu1 %v2715_v25  ;;  %v1675_v25 = vld [vmem:[%s3397_s17 + $0x168] sm:$0xff] }
 0x1c3   : > { %v2737_v31 = vpack.c.bf16 %v1675_v25, %v1674_v23 }
 0x1c4   : > { %2686 = vmatpush3.bf16.msra.mxu0 %v2685_v29  ;;  %v1693_v29 = vld [vmem:[%s3397_s17 + $0x1f8] sm:$0xff] }
 0x1c5   : > { %2718 = vmatpush3.bf16.msra.mxu1 %v2717_v33  ;;  %2688 = vmatprep.subr.bf16.mxu0 %v2687_v34  ;;  %v1644_v33 = vld [vmem:[%s3397_s17 + $0x70] sm:$0xff]  ;;  %v1645_v34 = vld [vmem:[%s3397_s17 + $0x78] sm:$0xff]  ;;  %v2739_v35 = vpack.c.bf16 %v1693_v29, %v1692_v28 }
 0x1c6   : > { %2720 = vmatprep.subr.bf16.mxu1 %v2719_v38  ;;  %v2709_v38 = vpack.c.bf16 %v1645_v34, %v1644_v33 }
 0x1c8   : > { %2690 = vmatpush3.bf16.msra.mxu0 %v2689_v42  ;;  %v952_v42 = vsub.s32 0, %v951_v41 }
 0x1c9   : > { %2722 = vmatpush3.bf16.msra.mxu1 %v2721_v46  ;;  %2692 = vmatprep.subr.bf16.mxu0 %v2691_v47  ;;  %v964_v46 = vsub.s32 3, %v951_v41 }
 0x1ca   : > { %2724 = vmatprep.subr.bf16.mxu1 %v2723_v51  ;;  %v953_v47 = vrot.slane %v948_v43, %v952_v42 }
 0x1cb   : > { %v965_v50 = vrot.slane %v948_v43, %v964_v46 }
 0x1cc   : > { %2694 = vmatpush3.bf16.msra.mxu0 %v2693_v58 }
 0x1cd   : > { %2726 = vmatpush3.bf16.msra.mxu1 %v2725_v59  ;;  %2696 = vmatprep.subr.bf16.mxu0 %v2695_v60 }
 0x1ce   : > { %2728 = vmatprep.subr.bf16.mxu1 %v2727_v0 }
 0x1d0   : > { %2698 = vmatpush3.bf16.msra.mxu0 %v2697_v6 }
 0x1d1   : > { %2730 = vmatpush3.bf16.msra.mxu1 %v2729_v7  ;;  %2700 = vmatprep.subr.bf16.mxu0 %v2699_v8 }
 0x1d2   : > { %2732 = vmatprep.subr.bf16.mxu1 %v2731_v12 }
 0x1d4   : > { %2702 = vmatpush3.bf16.msra.mxu0 %v2701_v18 }
 0x1d5   : > { %2734 = vmatpush3.bf16.msra.mxu1 %v2733_v19  ;;  %2704 = vmatprep.subr.bf16.mxu0 %v2703_v20 }
 0x1d6   : > { %2736 = vmatprep.subr.bf16.mxu1 %v2735_v24 }
 0x1d8   : > { %2706 = vmatpush3.bf16.msra.mxu0 %v2705_v30 }
 0x1d9   : > { %2738 = vmatpush3.bf16.msra.mxu1 %v2737_v31  ;;  %2708 = vmatprep.subr.bf16.mxu0 %v2707_v32 }
 0x1da   : > { %2740 = vmatprep.subr.bf16.mxu1 %v2739_v35 }
 0x1dc   : > { %2710 = vmatpush3.bf16.msra.mxu0 %v2709_v38 }
 0x1dd   : > { %2742 = vmatpush3.bf16.msra.mxu1 %v2741_v39 }
 0x292   : > { %v1249_v51 = vpop.f32.mrb[0].mxu0 }
 0x293   : > { %v2743_v52 = vadd.f32 %v1249_v51, %v953_v47  ;;  %v1533_v53 = vpop.f32.mrb[0].mxu1  ;;  %v1251_v54 = vpop.f32.mrb[1].mxu0 }
 0x294   : > { %v2745_v55 = vadd.f32 %v1533_v53, %v961_v48  ;;  %v2744_v56 = vadd.f32 %v1251_v54, %v957_v49  ;;  %v1535_v57 = vpop.f32.mrb[1].mxu1 }
 0x295   : > { %2834 = vtanh.f32 %v2743_v52  ;;  %v2746_v58 = vadd.f32 %v1535_v57, %v965_v50 }
 0x296   : > { %2836 = vtanh.f32 %v2745_v55 }
 0x297   : > { %2838 = vtanh.f32 %v2744_v56 }
 0x298   : > { %2840 = vtanh.f32 %v2746_v58 }
 0x29f   : > { %v3988_v59 = vpop.eup %2834 }
 0x2a0   : > { %v3990_v60 = vpop.eup %2836  ;;  %v1542_v61 = vrot.slane %v3988_v59, 4  ;;  %v1570_v62 = vmul.f32 %v3988_v59, %v3988_v59 }
 0x2a1   : > { %v3995_v63 = vpop.eup %2838  ;;  %v1554_v0 = vrot.slane %v3990_v60, 4  ;;  %v1572_v1 = vmul.f32 %v3990_v60, %v3990_v60 }
 0x2a2   : > { %v4000_v2 = vpop.eup %2840  ;;  %v1548_v3 = vrot.slane %v3995_v63, 4  ;;  %v1571_v4 = vmul.f32 %v3995_v63, %v3995_v63  ;;  %v1543_v5 = vadd.f32 %v3988_v59, %v1542_v61  ;;  %v1574_v6 = vrot.slane %v1570_v62, 4 }
 0x2a3   : > { %v1560_v7 = vrot.slane %v4000_v2, 4  ;;  %v1573_v8 = vmul.f32 %v4000_v2, %v4000_v2  ;;  %v1555_v9 = vadd.f32 %v3990_v60, %v1554_v0  ;;  %v1586_v10 = vrot.slane %v1572_v1, 4 }
 0x2a4   : > { %v1549_v11 = vadd.f32 %v3995_v63, %v1548_v3  ;;  %v1580_v12 = vrot.slane %v1571_v4, 4  ;;  %v1544_v13 = vrot.slane %v1543_v5, 2  ;;  %v1575_v14 = vadd.f32 %v1574_v6, %v1570_v62 }
 0x2a5   : > { %v1561_v15 = vadd.f32 %v4000_v2, %v1560_v7  ;;  %v1592_v16 = vrot.slane %v1573_v8, 4  ;;  %v1556_v17 = vrot.slane %v1555_v9, 2  ;;  %v1587_v18 = vadd.f32 %v1586_v10, %v1572_v1 }
 0x2a6   : > { %v1550_v19 = vrot.slane %v1549_v11, 2  ;;  %v1581_v20 = vadd.f32 %v1580_v12, %v1571_v4  ;;  %v1545_v21 = vadd.f32 %v1544_v13, %v1543_v5  ;;  %v1576_v22 = vrot.slane %v1575_v14, 2 }
 0x2a7   : > { %v1562_v23 = vrot.slane %v1561_v15, 2  ;;  %v1593_v24 = vadd.f32 %v1592_v16, %v1573_v8  ;;  %v1557_v25 = vadd.f32 %v1556_v17, %v1555_v9  ;;  %v1588_v26 = vrot.slane %v1587_v18, 2 }
 0x2a8   : > { %v1551_v27 = vadd.f32 %v1550_v19, %v1549_v11  ;;  %v1582_v28 = vrot.slane %v1581_v20, 2  ;;  %v1546_v29 = vrot.slane %v1545_v21, 1  ;;  %v1577_v30 = vadd.f32 %v1576_v22, %v1575_v14 }
 0x2a9   : > { %v1563_v31 = vadd.f32 %v1562_v23, %v1561_v15  ;;  %v1594_v32 = vrot.slane %v1593_v24, 2  ;;  %v1558_v33 = vrot.slane %v1557_v25, 1  ;;  %v1589_v34 = vadd.f32 %v1588_v26, %v1587_v18 }
 0x2aa   : > { %v1552_v35 = vrot.slane %v1551_v27, 1  ;;  %v1583_v36 = vadd.f32 %v1582_v28, %v1581_v20  ;;  %v1547_v37 = vadd.f32 %v1546_v29, %v1545_v21  ;;  %v1578_v38 = vrot.slane %v1577_v30, 1 }
 0x2ab   : > { %v1564_v39 = vrot.slane %v1563_v31, 1  ;;  %v1595_v40 = vadd.f32 %v1594_v32, %v1593_v24  ;;  %v1559_v41 = vadd.f32 %v1558_v33, %v1557_v25  ;;  %v1590_v42 = vrot.slane %v1589_v34, 1 }
 0x2ac   : > { %v1553_v43 = vadd.f32 %v1552_v35, %v1551_v27  ;;  %v1584_v44 = vrot.slane %v1583_v36, 1  ;;  %v1566_v45 = vmul.f32 0.125, %v1547_v37  ;;  %v1579_v46 = vadd.f32 %v1578_v38, %v1577_v30 }
 0x2ad   : > { %v1565_v47 = vadd.f32 %v1564_v39, %v1563_v31  ;;  %v1596_v48 = vrot.slane %v1595_v40, 1  ;;  %v1568_v49 = vmul.f32 0.125, %v1559_v41  ;;  %v1591_v50 = vadd.f32 %v1590_v42, %v1589_v34 }
 0x2ae   : > { %v1567_v51 = vmul.f32 0.125, %v1553_v43  ;;  %v1585_v52 = vadd.f32 %v1584_v44, %v1583_v36  ;;  %v1598_v53 = vmul.f32 0.125, %v1579_v46  ;;  %v1602_v54 = vmul.f32 %v1566_v45, %v1566_v45 }
 0x2af   : > { %v1569_v55 = vmul.f32 0.125, %v1565_v47  ;;  %v1597_v56 = vadd.f32 %v1596_v48, %v1595_v40  ;;  %v1600_v57 = vmul.f32 0.125, %v1591_v50  ;;  %v1604_v3 = vmul.f32 %v1568_v49, %v1568_v49 }
 0x2b0   : > { %v1599_v58 = vmul.f32 0.125, %v1585_v52  ;;  %v1603_v61 = vmul.f32 %v1567_v51, %v1567_v51  ;;  %v1606_v62 = vsub.f32 %v1598_v53, %v1602_v54  ;;  %v1610_v11 = vsub.f32 %v3988_v59, %v1566_v45 }
 0x2b1   : > { %v1601_v0 = vmul.f32 0.125, %v1597_v56  ;;  %v1605_v1 = vmul.f32 %v1569_v55, %v1569_v55  ;;  %v1608_v7 = vsub.f32 %v1600_v57, %v1604_v3  ;;  %v1611_v13 = vsub.f32 %v3995_v63, %v1567_v51 }
 0x2b2   : > { %v1607_v4 = vsub.f32 %v1599_v58, %v1603_v61  ;;  %v1614_v5 = vadd.f32 1e-05, %v1606_v62  ;;  %v1613_v16 = vsub.f32 %v4000_v2, %v1569_v55  ;;  %v1612_v19 = vsub.f32 %v3990_v60, %v1568_v49 }
 0x2b3   : > { %v1609_v6 = vsub.f32 %v1601_v0, %v1605_v1  ;;  %v1616_v10 = vadd.f32 1e-05, %v1608_v7 }
 0x2b4   : > { %v1615_v8 = vadd.f32 1e-05, %v1607_v4  ;;  %2842 = vrsqrt.f32 %v1614_v5 }
 0x2b5   : > { %v1617_v9 = vadd.f32 1e-05, %v1609_v6 }
 0x2b6   : > { %2844 = vrsqrt.f32 %v1615_v8 }
 0x2b7   : > { %2846 = vrsqrt.f32 %v1617_v9 }
 0x2b8   : > { %2848 = vrsqrt.f32 %v1616_v10 }
 0x2be   : > { %v2843_v12 = vpop.eup %2842 }
 0x2bf   : > { %v1622_v14 = vmul.f32 %v2843_v12, %v1610_v11 }
 0x2c0   : > { %v2845_v15 = vpop.eup %2844 }
 0x2c1   : > { %v2847_v17 = vpop.eup %2846  ;;  %v1623_v18 = vmul.f32 %v2845_v15, %v1611_v13  ;;  %1626 = vst [vmem:[%s417_s20] sm:$0xff] %v1622_v14 }
 0x2c2   : > { %v2849_v20 = vpop.eup %2848  ;;  %v1625_v21 = vmul.f32 %v2847_v17, %v1613_v16 }
 0x2c3   : > { %1627 = vst [vmem:[%s417_s20 + $0x8] sm:$0xff] %v1623_v18  ;;  %1765 = vmatprep.mubr.f32.mxu0 %v1623_v18  ;;  %v1624_v59 = vmul.f32 %v2849_v20, %v1612_v19 }
 0x2c4   : > { %1629 = vst [vmem:[%s417_s20 + $0x18] sm:$0xff] %v1625_v21  ;;  %1835 = vmatprep.mubr.f32.mxu1 %v1625_v21  ;;  %1766 = vmatmul.mubr.f32.vlgmr.msra.gmra.mrb[2].mxu0 %v1622_v14 }
 0x2c5   : > { %1628 = vst [vmem:[%s417_s20 + $0x10] sm:$0xff] %v1624_v59  ;;  %1836 = vmatmul.mubr.f32.vlgmr.msra.gmra.mrb[2].mxu1 %v1624_v59 }
 0x2c6   : > { %3015 = shalt.err (!%p3012_p6)
}
 0x2c7   : > { %s3016_s11 = scalar_lea.hbm %s4021_s10, 512  ;;  %s3020_s26 = scalar_lea.hbm %s4096_s5, 1024 }
 0x2c8   : > { %p3017_p5 = scmp.ne.s32.totalorder %s4021_s10, %s3016_s11  ;;  %p3021_p8 = scmp.lt.u32.totalorder %s4021_s10, %s4096_s5 }
 0x2c9   : > { %p3022_p12 = scmp.lt.u32.totalorder %s3020_s26, %s3016_s11  ;;  %p3024_p9 = scmp.lt.u32.totalorder %s3016_s11, %s4021_s10 }
 0x2ca   : > { %p3018_p7 = pnand %p3017_p5, %p4130_p10 }
 0x2cb   : > { %p3023_p2 = por %p3022_p12, %p3021_p8 }
 0x2cc   : > { %p3019_p0 = pneg %p3018_p7 }
 0x2cd   : > { %p3025_p11 = por %p3024_p9, %p3023_p2 }
 0x2cf   : > { %p3026_p4 = pnand %p3025_p11, %p3019_p0 }
 0x2d1   : > { %3029 = shalt.err (!%p3026_p4)
}
 0x2d2   : > { %2769 = dma.vmem_to_hbm [thread:$0]  (%p4130_p10), %s1864_s3, 512, %s4021_s10, %s1844_s16  }
 0x2d3   : > { %s372_s15 = scalar_lea.vmem [#allocation10], %s3375_s28  ;;  %s2083_s1 = sshll.u32 %s3375_s28, 3 }
 0x2d4   : > { %v2084_v2 = vld [vmem:[%s372_s15] ss:$0 sm:$0xff]  ;;  %s2089_s17 = sshll.u32 %s3177_s25, 7  ;;  %s424_s7 = scalar_lea.vmem [#allocation12], %s2083_s1 }
 0x2d5   : > { %s1876_s20 = sshll.u32 %s424_s7, 4  ;;  %s4047_s27 = scalar_lea.hbm %s4097_s6, %s2089_s17  ;;  %s4049_s20 = int_to_ptr.vmem [resolvable:$true] %s1876_s20 }
 0x2d6   : > { %s1849_s10 = scalar_lea.sflag [#allocation13], %s3375_s28  ;;  %s3030_s3 = scalar_lea.vmem %s4049_s20, 128 }
 0x2d7   : > { %p3031_p3 = scmp.ne.s32.totalorder %s4049_s20, %s3030_s3  ;;  %s3120_s25 = smov [#allocation12]  }
 0x2d8   : > { %s3034_s16 = sshll.u32 %s3120_s25, 4  ;;  %s3035_s16 = int_to_ptr.vmem [resolvable:$false] %s3034_s16 }
 0x2d9   : > { %p3032_p1 = pnand %p3031_p3, %p4130_p10  ;;  %s3036_s23 = scalar_lea.vmem %s3035_s16, 256 }
 0x2da   : > { %p3037_p6 = scmp.lt.s32.totalorder %s4049_s20, %s3035_s16  ;;  %p3038_p5 = scmp.lt.s32.totalorder %s3036_s23, %s3030_s3 }
 0x2db   : > { %p3033_p13 = pneg %p3032_p1 }
 0x2dc   : > { %p3039_p7 = por %p3038_p5, %p3037_p6 }
 0x2de   : > { %p3040_p0 = pnand %p3039_p7, %p3033_p13 }
 0x397   : > { %v2129_v60 = vpop.f32.mrb[2].mxu0 }
 0x398   : > { %v2164_v63 = vpop.f32.mrb[2].mxu1  ;;  %v2130_v22 = vpop.f32.mrb[3].mxu0 }
 0x399   : > { %v2131_v23 = vadd.f32 %v2130_v22, %v2129_v60  ;;  %v2165_v24 = vpop.f32.mrb[3].mxu1 }
 0x39a   : > { %v2166_v25 = vadd.f32 %v2165_v24, %v2164_v63 }
 0x39b   : > { %v1768_v26 = vadd.f32 %v2131_v23, %v2084_v2 }
 0x39d   : > { %v1838_v27 = vadd.f32 %v2166_v25, %v1768_v26 }
 0x39f   : > { %2850 = vtanh.f32 %v1838_v27 }
 0x3a9   : > { %v2851_v28 = vpop.eup %2850 }
 0x3aa   : > { %1842 = vst [vmem:[%s424_s7] sm:$0xff] %v2851_v28 }
 0x3ab   : > { %3043 = shalt.err (!%p3040_p0)
}
 0x3ac   : > { %s3044_s28 = scalar_lea.hbm %s4047_s27, 128  ;;  %s3048_s30 = scalar_lea.hbm %s4097_s6, 256 }
 0x3ad   : > { %p3045_p8 = scmp.ne.s32.totalorder %s4047_s27, %s3044_s28  ;;  %p3049_p9 = scmp.lt.u32.totalorder %s4047_s27, %s4097_s6 }
 0x3ae   : > { %p3050_p11 = scmp.lt.u32.totalorder %s3048_s30, %s3044_s28  ;;  %p3052_p3 = scmp.lt.u32.totalorder %s3044_s28, %s4047_s27 }
 0x3af   : > { %p3046_p12 = pnand %p3045_p8, %p4130_p10 }
 0x3b0   : > { %p3051_p4 = por %p3050_p11, %p3049_p9 }
 0x3b1   : > { %p3047_p2 = pneg %p3046_p12 }
 0x3b2   : > { %p3053_p1 = por %p3052_p3, %p3051_p4 }
 0x3b4   : > { %p3054_p13 = pnand %p3053_p1, %p3047_p2 }
 0x3b6   : > { %3057 = shalt.err (!%p3054_p13)
}
 0x3b7   : > { %2770 = dma.vmem_to_hbm [thread:$0]  (%p4130_p10), %s4049_s20, 128, %s4047_s27, %s1849_s10  }
 0x3b8 PF: > { %s4131_s19 = sld [smem:[#allocation22_spill]]  ;;  %s1888_s26 = sand.u32 1, %s3096_s21  }
 0x3b9   : > { %p4133_p5 = scmp.ge.s32.totalorder %s3108_s24, 2  ;;  %s1889_s14 = scalar_lea.sflag [#allocation4], %s1888_s26 }
 0x3be   : > { %p4132_p6 = scmp.ne.s32.totalorder %s4131_s19, 0 }
 0x3c0   : > { %p2790_p7 = pnand %p4133_p5, %p4132_p6 }
 0x3c2   : > { %3087 = dma.done.wait (!%p2790_p7), %s1889_s14, 512  }
 0x3c3   : > { %3089 = vsyncadd (!%p2790_p7), %s1889_s14, 4294966784  ;;  %s1898_s13 = scalar_lea.sflag [#allocation13], %s1888_s26 }
 0x3c4   : > { %3091 = dma.done.wait (!%p2790_p7), %s1898_s13, 128  }
 0x3c5   : > { %3093 = vsyncadd (!%p2790_p7), %s1898_s13, 4294967168  ;;  %s4134_s24 = sld [smem:[#allocation20_spill]]  ;;  %s4135_s8 = sld [smem:[#allocation19_spill]] }
 0x3c6   : > { %s4136_s23 = sld [smem:[#allocation21_spill]]  ;;  %s4137_s21 = smov %s3100_s22 }
 0x3cb   : > { %p29_p10 = scmp.ge.s32.totalorder %s4134_s24, 4   ;;  %s4138_s22 = smov %s4135_s8 }
 0x3cd   :  { %31 = sbr.rel (!%p29_p10) target bundleno = 15 (0xf), region = 150 }
 0x3d4   :  { %1903 = vsyncpa [#allocation3], 1 }
 0x3d5   :  { %1905 = vsyncpa [#allocation3 + $0x1], 1 }
 0x3d6   :  { %1906 = vsyncpa [#allocation6], 1 }
 0x3d7   :  { %1908 = vsyncpa [#allocation6 + $0x1], 1 }
 0x3d8   :  { %1909 = vsyncpa [#allocation9], 1 }
 0x3d9   :  { %1911 = vsyncpa [#allocation9 + $0x1], 1 }
 0x3da   :  { %1912 = vsyncpa [#allocation4], 1 }
 0x3db   :  { %1914 = vsyncpa [#allocation4 + $0x1], 1 }
 0x3dc   :  { %1915 = vsyncpa [#allocation13], 1 }
 0x3dd   :  { %1917 = vsyncpa [#allocation13 + $0x1], 1 }

</bundles_post_ra>
